<compile_context>
chip_gen: v7x
topology: tpu7x:2x2x1
jax: 0.10.0
libtpu: 0.0.40
codegen_flags: <defaults>
</compile_context>

<pallas_src>
import functools

import jax
import jax.numpy as jnp
from jax.experimental import pallas as pl
from jax.experimental.pallas import tpu as pltpu

EPS = 1e-5  # nn.BatchNorm2d default eps

_VMEM = pl.BlockSpec(memory_space=pltpu.MemorySpace.VMEM)


# ---------------------------------------------------------------------------
# In-kernel helpers
# ---------------------------------------------------------------------------
def _lane_group_sum(v, step, groups):
    """v: (1, step*groups).  Returns r with r[j] = sum_k v[(j - k*step) mod lanes],
    i.e. the per-channel (lane-group of period `step`) sum, broadcast back to every
    lane of that channel.  Uses log2(groups) lane rolls when groups is a power of 2."""
    if groups <= 1:
        return v
    if (groups & (groups - 1)) == 0:          # power of two -> log-doubling
        r, sh = v, step
        while sh < step * groups:
            r = r + pltpu.roll(r, shift=sh, axis=1)
            sh *= 2
        return r
    r = v
    for k in range(1, groups):
        r = r + pltpu.roll(v, shift=k * step, axis=1)
    return r


# ---------------------------------------------------------------------------
# The single fused Pallas kernel
# ---------------------------------------------------------------------------
def _cnn_fused_kernel(layer_cfgs, head_cfg,
                      x_ref, band_ref, gb_ref, wh_ref, bh_ref, out_ref, scr_ref):
    """Entire CnnBN forward; all operands VMEM-resident, single invocation.

    Activation slab `a` has shape (N*H, W*C): rows=(n,h), lanes=(w,c) with c minor.
    layer_cfgs: per layer (nh, hl, wc_in, wc_out, cout, wl, pool).
    head_cfg:   (h_last, w_last, c_last).
    """
    def mxu(x, w):
        # bf16 MXU operands, f32 accumulate (review item: single-pass MXU).
        return jnp.dot(x.astype(jnp.bfloat16), w, preferred_element_type=jnp.float32)

    a = x_ref[...]                                            # (N*H0, W0*Cin) f32

    for li, (nh, hl, wc_in, wc_out, cout, wl, pool) in enumerate(layer_cfgs):
        # ---- Conv3x3(pad=1).  Vertical taps: sublane rolls + image-boundary mask.
        # Horizontal taps, zero padding and (if the input was pooled) the even-w
        # lane compaction are all folded into the banded weight matrix, so the
        # whole conv is ONE K=3*wc_in MXU matmul.  Conv bias omitted: it cancels
        # exactly under the training-mode BatchNorm below.
        hidx = jax.lax.broadcasted_iota(jnp.int32, (nh, wc_in), 0) % hl
        a_up = jnp.where(hidx == 0, 0.0, pltpu.roll(a, shift=1, axis=0))
        a_dn = jnp.where(hidx == hl - 1, 0.0, pltpu.roll(a, shift=nh - 1, axis=0))
        a3 = jnp.concatenate([a_up, a, a_dn], axis=-1)        # (nh, 3*wc_in) f32
        y = mxu(a3, band_ref[li, :3 * wc_in, :wc_out])        # (nh, wc_out) f32

        # ---- BatchNorm2d (batch statistics, biased variance) + ReLU.
        # Rows reduced FIRST (sublane reduce), then per-channel sum over the w
        # lane-groups (+ broadcast back) via log2(wl) lane rolls.  All f32 (VPU/EUP).
        m = float(nh * wl)
        mean = _lane_group_sum(jnp.sum(y, axis=0, keepdims=True), cout, wl) / m
        cent = y - mean
        var = _lane_group_sum(jnp.sum(cent * cent, axis=0, keepdims=True), cout, wl) / m
        gamma = gb_ref[2 * li:2 * li + 1, :wc_out]
        beta = gb_ref[2 * li + 1:2 * li + 2, :wc_out]
        a = jnp.maximum(cent * jax.lax.rsqrt(var + EPS) * gamma + beta, 0.0)

        # ---- MaxPool2d(2).  Rows: adjacent-row max, then keep even rows with a
        # stride-2 sublane read from scratch.  Cols: adjacent w-group max via a
        # lane roll; surviving even-w groups are NOT compacted — the next layer's
        # band matrix has zero rows at the stale odd-w lanes.
        if pool:
            pm = jnp.maximum(a, pltpu.roll(a, shift=nh - 1, axis=0))   # max(a[i], a[i+1])
            scr_ref[pl.ds(0, nh), :wc_out] = pm
            rows = scr_ref[pl.ds(0, nh // 2, 2), :wc_out]              # even rows only
            a = jnp.maximum(rows, pltpu.roll(rows, shift=wc_out - cout, axis=1))

    # ---- Head.  MaxPool2d(2) + AdaptiveMaxPool2d((1,1)) compose to a global HxW
    # max: window-max over h via sublane rolls + stride-H row read, max over w via
    # static lane slices.  Then the fused Linear head.
    h4, w4, c4 = head_cfg
    nh4, wc4 = a.shape
    t = a
    for k in range(1, h4):
        t = jnp.maximum(t, pltpu.roll(a, shift=nh4 - k, axis=0))       # max(a[i..i+h4-1])
    scr_ref[pl.ds(0, nh4), :wc4] = t
    g = scr_ref[pl.ds(0, nh4 // h4, h4), :wc4]                         # (N, wc4): per-image max_h
    phi = g[:, 0:c4]
    for k in range(1, w4):
        phi = jnp.maximum(phi, g[:, k * c4:(k + 1) * c4])              # (N, c4): global max
    out_ref[...] = jnp.dot(phi, wh_ref[...],
                           preferred_element_type=jnp.float32) + bh_ref[...]


# ---------------------------------------------------------------------------
# One-time operand construction (weight-derived, batch-independent)
# ---------------------------------------------------------------------------
def prepare_operands(params, image_hw):
    """Builds the stacked banded conv matrices, packed gamma/beta and head weights.
    Called ONCE at parameter-load time; cnn_bn_forward only reshapes the input."""
    h0, w0 = image_hw
    convs = params["convs"]
    pools = (False, True, True, False)   # block-4's MaxPool2d folds into the head's global max
    ci0 = convs[0][0].shape[2]
    cin_pad = ci0 + (-ci0) % 4           # pad input channels 3 -> 4 for lane density

    # Static per-layer geometry: (hl, wl, stride, ci_phys, cout).
    geo = []
    h, w, stride = h0, w0, 1
    for li, ((wt, _b, _g, _be), pool) in enumerate(zip(convs, pools)):
        ci, co = wt.shape[2], wt.shape[3]
        geo.append((h, w, stride, cin_pad if li == 0 else ci, co))
        if pool:
            h, w, stride = h // 2, w // 2, 2
        else:
            stride = 1

    max_k = max(3 * s * wl * ci for (_, wl, s, ci, _) in geo)
    max_n = max(wl * co for (_, wl, _, _, co) in geo)
    bands = jnp.zeros((len(convs), max_k, max_n), jnp.float32)
    gb = jnp.zeros((2 * len(convs), max_n), jnp.float32)

    def band_block(wt, wl, s):
        # Banded conv matrix on the (w,c) lane layout.  `up` embeds the logical
        # input width into the (possibly pooled, stride-s) physical lane groups.
        up = jnp.kron(jnp.eye(wl, dtype=jnp.float32), jnp.eye(s, 1, dtype=jnp.float32))
        blocks = []
        for dh in range(3):
            blk = sum(jnp.kron(up @ jnp.eye(wl, k=1 - dw, dtype=jnp.float32),
                               wt[dh, dw].astype(jnp.float32)) for dw in range(3))
            blocks.append(blk)                              # (s*wl*ci, wl*co)
        return jnp.concatenate(blocks, axis=0)              # (3*s*wl*ci, wl*co)

    for li, ((wt, _b, g, be), (hl, wl, s, ci_phys, co)) in enumerate(zip(convs, geo)):
        if wt.shape[2] != ci_phys:                           # layer 1: pad cin 3 -> 4
            wt = jnp.pad(wt, ((0, 0), (0, 0), (0, ci_phys - wt.shape[2]), (0, 0)))
        bb = band_block(wt, wl, s)
        bands = bands.at[li, :bb.shape[0], :bb.shape[1]].set(bb)
        gb = gb.at[2 * li, :wl * co].set(jnp.tile(g.astype(jnp.float32), wl))
        gb = gb.at[2 * li + 1, :wl * co].set(jnp.tile(be.astype(jnp.float32), wl))

    w_head, b_head = params["head"]
    return {
        "bands": bands.astype(jnp.bfloat16),                 # MXU operand -> bf16
        "gb": gb,                                            # BN affine stays f32
        "w_head": w_head.astype(jnp.float32),
        "b_head": b_head.astype(jnp.float32).reshape(1, -1),
        "cin_pad": cin_pad,
        "geo": tuple(geo),
        "pools": pools,
        "head_chw": (geo[-1][0], geo[-1][1], geo[-1][4]),    # (H, W, C) seen by the head
    }


# ---------------------------------------------------------------------------
# Forward wrapper: only input layout work + the single pallas_call per step
# ---------------------------------------------------------------------------
def cnn_bn_forward(x_nchw, ops):
    n, cin, h0, w0 = x_nchw.shape
    x = jnp.transpose(x_nchw, (0, 2, 3, 1)).astype(jnp.float32)       # NCHW -> NHWC
    if ops["cin_pad"] != cin:
        x = jnp.pad(x, ((0, 0), (0, 0), (0, 0), (0, ops["cin_pad"] - cin)))
    slab = x.reshape(n * h0, w0 * ops["cin_pad"])                     # lane-dense slab

    cfgs = tuple((n * hl, hl, s * wl * ci, wl * co, co, wl, pool)
                 for (hl, wl, s, ci, co), pool in zip(ops["geo"], ops["pools"]))
    max_wc = max(cfg[3] for cfg in cfgs)
    num_classes = ops["b_head"].shape[-1]

    kernel = functools.partial(_cnn_fused_kernel, cfgs, ops["head_chw"])
    return pl.pallas_call(
        kernel,
        out_shape=jax.ShapeDtypeStruct((n, num_classes), jnp.float32),
        in_specs=[_VMEM] * 5,
        out_specs=_VMEM,
        scratch_shapes=[pltpu.VMEM((n * h0, max_wc), jnp.float32)],
    )(slab, ops["bands"], ops["gb"], ops["w_head"], ops["b_head"])


# ---------------------------------------------------------------------------
# Deterministic parameter initialization (shapes from CnnBN.__init__)
# ---------------------------------------------------------------------------
def init_params(key, c, num_classes):
    chans = [(3, c), (c, 2 * c), (2 * c, 4 * c), (4 * c, 8 * c)]
    convs = []
    for cin, cout in chans:
        key, k1, k2 = jax.random.split(key, 3)
        bound = 1.0 / float(jnp.sqrt(cin * 9))
        w = jax.random.uniform(k1, (3, 3, cin, cout), jnp.float32, -bound, bound)
        b = jax.random.uniform(k2, (cout,), jnp.float32, -bound, bound)
        gamma = jnp.ones((cout,), jnp.float32)
        beta = jnp.zeros((cout,), jnp.float32)
        convs.append((w, b, gamma, beta))        # bias kept (used by the reference)
    key, k1, k2 = jax.random.split(key, 3)
    bound = 1.0 / float(jnp.sqrt(8 * c))
    w_head = jax.random.uniform(k1, (8 * c, num_classes), jnp.float32, -bound, bound)
    b_head = jax.random.uniform(k2, (num_classes,), jnp.float32, -bound, bound)
    return {"convs": convs, "head": (w_head, b_head)}


# ---------------------------------------------------------------------------
# Pure-JAX reference (correctness check only; includes the conv bias)
# ---------------------------------------------------------------------------
def ref_forward(x_nchw, params):
    x = jnp.transpose(x_nchw, (0, 2, 3, 1)).astype(jnp.float32)
    pools = [False, True, True, True]
    for (w, b, g, beta), do_pool in zip(params["convs"], pools):
        y = jax.lax.conv_general_dilated(
            x, w, window_strides=(1, 1), padding="SAME",
            dimension_numbers=("NHWC", "HWIO", "NHWC")) + b
        mean = jnp.mean(y, axis=(0, 1, 2), keepdims=True)
        var = jnp.mean((y - mean) ** 2, axis=(0, 1, 2), keepdims=True)
        y = (y - mean) * jax.lax.rsqrt(var + EPS) * g + beta
        x = jnp.maximum(y, 0.0)
        if do_pool:
            nb, hh, ww, cc = x.shape
            x = x.reshape(nb, hh // 2, 2, ww // 2, 2, cc).max(axis=(2, 4))
    phi = x.max(axis=(1, 2))
    w_head, b_head = params["head"]
    return phi @ w_head + b_head


# TODO(synk): BatchNorm running_mean/running_var buffer updates (training-mode side
# effect that does not affect the returned logits) are not materialized.

if __name__ == "__main__":
    c, num_classes = 4, 10
    key = jax.random.PRNGKey(0)
    key, kx = jax.random.split(key)
    x = jax.random.normal(kx, (2, 3, 16, 16), jnp.float32)  # NCHW, like PyTorch
    params = init_params(key, c, num_classes)

    # Weight-derived operands built ONCE; the jitted forward only reshapes x and
    # launches the single fused kernel.
    ops = prepare_operands(params, image_hw=(16, 16))
    fwd = jax.jit(functools.partial(cnn_bn_forward, ops=ops))
    out = fwd(x)
    jax.block_until_ready(out)

    ref = ref_forward(x, params)
    assert out.shape == (2, num_classes)
    # Tolerance accounts for single-pass bf16 MXU operands in the kernel vs the
    # f32 XLA conv reference; a structural/layout bug would be O(1) off.
    assert jnp.allclose(out, ref, rtol=7e-2, atol=7e-2), (out, ref)
    print("KERNEL_OK")
</pallas_src>

<mosaic_0001>
module attributes {stable_mosaic.version = 11 : i64} {
  func.func @_cnn_fused_kernel(%arg0: memref<32x64xf32, #tpu.memory_space<vmem>>, %arg1: memref<4x384x128xbf16, #tpu.memory_space<vmem>>, %arg2: memref<8x128xf32, #tpu.memory_space<vmem>>, %arg3: memref<32x10xf32, #tpu.memory_space<vmem>>, %arg4: memref<1x10xf32, #tpu.memory_space<vmem>>, %arg5: memref<2x10xf32, #tpu.memory_space<vmem>>, %arg6: memref<32x128xf32, #tpu.memory_space<vmem>>) attributes {dimension_semantics = [], scalar_prefetch = 0 : i64, scratch_operands = 1 : i64, tpu.core_type = #tpu.core_type<tc>} {
    %c0 = arith.constant 0 : index
    %c0_0 = arith.constant 0 : index
    %0 = vector.load %arg0[%c0, %c0_0] : memref<32x64xf32, #tpu.memory_space<vmem>>, vector<32x64xf32>
    %1 = tpu.iota {dimensions = array<i32: 0>} : vector<32x64xi32>
    %c16_i32 = arith.constant 16 : i32
    %c0_i32 = arith.constant 0 : i32
    %2 = arith.cmpi eq, %c16_i32, %c0_i32 : i32
    %c1_i32 = arith.constant 1 : i32
    %3 = arith.select %2, %c1_i32, %c16_i32 : i32
    %4 = vector.broadcast %3 : i32 to vector<32x64xi32>
    %5 = arith.remsi %1, %4 : vector<32x64xi32>
    %c0_i32_1 = arith.constant 0 : i32
    %6 = vector.broadcast %c0_i32_1 : i32 to vector<32x64xi32>
    %7 = arith.cmpi ne, %5, %6 : vector<32x64xi32>
    %c0_i32_2 = arith.constant 0 : i32
    %8 = vector.broadcast %c0_i32_2 : i32 to vector<32x64xi32>
    %9 = arith.cmpi slt, %5, %8 : vector<32x64xi32>
    %c0_i32_3 = arith.constant 0 : i32
    %10 = arith.cmpi slt, %3, %c0_i32_3 : i32
    %11 = vector.broadcast %10 : i1 to vector<32x64xi1>
    %12 = vector.broadcast %11 : vector<32x64xi1> to vector<32x64xi1>
    %13 = arith.xori %9, %12 : vector<32x64xi1>
    %14 = arith.andi %13, %7 : vector<32x64xi1>
    %15 = vector.broadcast %3 : i32 to vector<32x64xi32>
    %16 = arith.addi %5, %15 : vector<32x64xi32>
    %17 = arith.select %14, %16, %5 : vector<32x64xi1>, vector<32x64xi32>
    %c0_i32_4 = arith.constant 0 : i32
    %18 = vector.broadcast %c0_i32_4 : i32 to vector<32x64xi32>
    %19 = arith.cmpi eq, %17, %18 : vector<32x64xi32>
    %c1_i32_5 = arith.constant 1 : i32
    %20 = tpu.dynamic_rotate %0 by %c1_i32_5 dim 0 : vector<32x64xf32>, i32 -> vector<32x64xf32>
    %cst = arith.constant 0.000000e+00 : f32
    %21 = vector.broadcast %cst : f32 to vector<32x64xf32>
    %22 = arith.select %19, %21, %20 : vector<32x64xi1>, vector<32x64xf32>
    %c15_i32 = arith.constant 15 : i32
    %23 = vector.broadcast %c15_i32 : i32 to vector<32x64xi32>
    %24 = arith.cmpi eq, %17, %23 : vector<32x64xi32>
    %c31_i32 = arith.constant 31 : i32
    %25 = tpu.dynamic_rotate %0 by %c31_i32 dim 0 : vector<32x64xf32>, i32 -> vector<32x64xf32>
    %cst_6 = arith.constant 0.000000e+00 : f32
    %26 = vector.broadcast %cst_6 : f32 to vector<32x64xf32>
    %27 = arith.select %24, %26, %25 : vector<32x64xi1>, vector<32x64xf32>
    %28 = tpu.concatenate %22, %0, %27 in 1 : vector<32x64xf32>, vector<32x64xf32>, vector<32x64xf32> -> vector<32x192xf32>
    %c0_7 = arith.constant 0 : index
    %c0_8 = arith.constant 0 : index
    %c0_9 = arith.constant 0 : index
    %29 = vector.load %arg1[%c0_7, %c0_8, %c0_9] : memref<4x384x128xbf16, #tpu.memory_space<vmem>>, vector<1x192x64xbf16>
    %30 = vector.shape_cast %29 : vector<1x192x64xbf16> to vector<192x64xbf16>
    %31 = arith.truncf %28 : vector<32x192xf32> to vector<32x192xbf16>
    %cst_10 = arith.constant dense<0.000000e+00> : vector<32x64xf32>
    %32 = tpu.matmul %31, %30, %cst_10 {dimension_numbers = #tpu.dot_dimension_numbers<[1], [0], [0], [1], [0, 0, 1, 1], [], []>} : vector<32x192xbf16>, vector<192x64xbf16>, vector<32x64xf32> -> vector<32x64xf32>
    %cst_11 = arith.constant dense<0.000000e+00> : vector<64xf32>
    %33 = vector.multi_reduction <add>, %32, %cst_11 [0] : vector<32x64xf32> to vector<64xf32>
    %34 = vector.shape_cast %33 : vector<64xf32> to vector<1x64xf32>
    %c4_i32 = arith.constant 4 : i32
    %35 = tpu.dynamic_rotate %34 by %c4_i32 dim 1 : vector<1x64xf32>, i32 -> vector<1x64xf32>
    %36 = arith.addf %34, %35 : vector<1x64xf32>
    %c8_i32 = arith.constant 8 : i32
    %37 = tpu.dynamic_rotate %36 by %c8_i32 dim 1 : vector<1x64xf32>, i32 -> vector<1x64xf32>
    %38 = arith.addf %36, %37 : vector<1x64xf32>
    %c16_i32_12 = arith.constant 16 : i32
    %39 = tpu.dynamic_rotate %38 by %c16_i32_12 dim 1 : vector<1x64xf32>, i32 -> vector<1x64xf32>
    %40 = arith.addf %38, %39 : vector<1x64xf32>
    %c32_i32 = arith.constant 32 : i32
    %41 = tpu.dynamic_rotate %40 by %c32_i32 dim 1 : vector<1x64xf32>, i32 -> vector<1x64xf32>
    %42 = arith.addf %40, %41 : vector<1x64xf32>
    %cst_13 = arith.constant 5.120000e+02 : f32
    %43 = vector.broadcast %cst_13 : f32 to vector<1x64xf32>
    %44 = arith.divf %42, %43 : vector<1x64xf32>
    %45 = vector.broadcast %44 : vector<1x64xf32> to vector<32x64xf32>
    %46 = arith.subf %32, %45 : vector<32x64xf32>
    %47 = arith.mulf %46, %46 : vector<32x64xf32>
    %cst_14 = arith.constant dense<0.000000e+00> : vector<64xf32>
    %48 = vector.multi_reduction <add>, %47, %cst_14 [0] : vector<32x64xf32> to vector<64xf32>
    %49 = vector.shape_cast %48 : vector<64xf32> to vector<1x64xf32>
    %c4_i32_15 = arith.constant 4 : i32
    %50 = tpu.dynamic_rotate %49 by %c4_i32_15 dim 1 : vector<1x64xf32>, i32 -> vector<1x64xf32>
    %51 = arith.addf %49, %50 : vector<1x64xf32>
    %c8_i32_16 = arith.constant 8 : i32
    %52 = tpu.dynamic_rotate %51 by %c8_i32_16 dim 1 : vector<1x64xf32>, i32 -> vector<1x64xf32>
    %53 = arith.addf %51, %52 : vector<1x64xf32>
    %c16_i32_17 = arith.constant 16 : i32
    %54 = tpu.dynamic_rotate %53 by %c16_i32_17 dim 1 : vector<1x64xf32>, i32 -> vector<1x64xf32>
    %55 = arith.addf %53, %54 : vector<1x64xf32>
    %c32_i32_18 = arith.constant 32 : i32
    %56 = tpu.dynamic_rotate %55 by %c32_i32_18 dim 1 : vector<1x64xf32>, i32 -> vector<1x64xf32>
    %57 = arith.addf %55, %56 : vector<1x64xf32>
    %cst_19 = arith.constant 5.120000e+02 : f32
    %58 = vector.broadcast %cst_19 : f32 to vector<1x64xf32>
    %59 = arith.divf %57, %58 : vector<1x64xf32>
    %c0_20 = arith.constant 0 : index
    %c0_21 = arith.constant 0 : index
    %60 = vector.load %arg2[%c0_20, %c0_21] : memref<8x128xf32, #tpu.memory_space<vmem>>, vector<1x64xf32>
    %c1 = arith.constant 1 : index
    %c0_22 = arith.constant 0 : index
    %61 = vector.load %arg2[%c1, %c0_22] : memref<8x128xf32, #tpu.memory_space<vmem>>, vector<1x64xf32>
    %cst_23 = arith.constant 9.99999974E-6 : f32
    %62 = vector.broadcast %cst_23 : f32 to vector<1x64xf32>
    %63 = arith.addf %59, %62 : vector<1x64xf32>
    %64 = math.rsqrt %63 : vector<1x64xf32>
    %65 = vector.broadcast %64 : vector<1x64xf32> to vector<32x64xf32>
    %66 = arith.mulf %46, %65 : vector<32x64xf32>
    %67 = vector.broadcast %60 : vector<1x64xf32> to vector<32x64xf32>
    %68 = arith.mulf %66, %67 : vector<32x64xf32>
    %69 = vector.broadcast %61 : vector<1x64xf32> to vector<32x64xf32>
    %70 = arith.addf %68, %69 : vector<32x64xf32>
    %cst_24 = arith.constant 0.000000e+00 : f32
    %71 = vector.broadcast %cst_24 : f32 to vector<32x64xf32>
    %72 = arith.maximumf %70, %71 : vector<32x64xf32>
    %73 = tpu.iota {dimensions = array<i32: 0>} : vector<32x64xi32>
    %c16_i32_25 = arith.constant 16 : i32
    %c0_i32_26 = arith.constant 0 : i32
    %74 = arith.cmpi eq, %c16_i32_25, %c0_i32_26 : i32
    %c1_i32_27 = arith.constant 1 : i32
    %75 = arith.select %74, %c1_i32_27, %c16_i32_25 : i32
    %76 = vector.broadcast %75 : i32 to vector<32x64xi32>
    %77 = arith.remsi %73, %76 : vector<32x64xi32>
    %c0_i32_28 = arith.constant 0 : i32
    %78 = vector.broadcast %c0_i32_28 : i32 to vector<32x64xi32>
    %79 = arith.cmpi ne, %77, %78 : vector<32x64xi32>
    %c0_i32_29 = arith.constant 0 : i32
    %80 = vector.broadcast %c0_i32_29 : i32 to vector<32x64xi32>
    %81 = arith.cmpi slt, %77, %80 : vector<32x64xi32>
    %c0_i32_30 = arith.constant 0 : i32
    %82 = arith.cmpi slt, %75, %c0_i32_30 : i32
    %83 = vector.broadcast %82 : i1 to vector<32x64xi1>
    %84 = vector.broadcast %83 : vector<32x64xi1> to vector<32x64xi1>
    %85 = arith.xori %81, %84 : vector<32x64xi1>
    %86 = arith.andi %85, %79 : vector<32x64xi1>
    %87 = vector.broadcast %75 : i32 to vector<32x64xi32>
    %88 = arith.addi %77, %87 : vector<32x64xi32>
    %89 = arith.select %86, %88, %77 : vector<32x64xi1>, vector<32x64xi32>
    %c0_i32_31 = arith.constant 0 : i32
    %90 = vector.broadcast %c0_i32_31 : i32 to vector<32x64xi32>
    %91 = arith.cmpi eq, %89, %90 : vector<32x64xi32>
    %c1_i32_32 = arith.constant 1 : i32
    %92 = tpu.dynamic_rotate %72 by %c1_i32_32 dim 0 : vector<32x64xf32>, i32 -> vector<32x64xf32>
    %cst_33 = arith.constant 0.000000e+00 : f32
    %93 = vector.broadcast %cst_33 : f32 to vector<32x64xf32>
    %94 = arith.select %91, %93, %92 : vector<32x64xi1>, vector<32x64xf32>
    %c15_i32_34 = arith.constant 15 : i32
    %95 = vector.broadcast %c15_i32_34 : i32 to vector<32x64xi32>
    %96 = arith.cmpi eq, %89, %95 : vector<32x64xi32>
    %c31_i32_35 = arith.constant 31 : i32
    %97 = tpu.dynamic_rotate %72 by %c31_i32_35 dim 0 : vector<32x64xf32>, i32 -> vector<32x64xf32>
    %cst_36 = arith.constant 0.000000e+00 : f32
    %98 = vector.broadcast %cst_36 : f32 to vector<32x64xf32>
    %99 = arith.select %96, %98, %97 : vector<32x64xi1>, vector<32x64xf32>
    %100 = tpu.concatenate %94, %72, %99 in 1 : vector<32x64xf32>, vector<32x64xf32>, vector<32x64xf32> -> vector<32x192xf32>
    %c1_37 = arith.constant 1 : index
    %c0_38 = arith.constant 0 : index
    %c0_39 = arith.constant 0 : index
    %101 = vector.load %arg1[%c1_37, %c0_38, %c0_39] : memref<4x384x128xbf16, #tpu.memory_space<vmem>>, vector<1x192x128xbf16>
    %102 = vector.shape_cast %101 : vector<1x192x128xbf16> to vector<192x128xbf16>
    %103 = arith.truncf %100 : vector<32x192xf32> to vector<32x192xbf16>
    %cst_40 = arith.constant dense<0.000000e+00> : vector<32x128xf32>
    %104 = tpu.matmul %103, %102, %cst_40 {dimension_numbers = #tpu.dot_dimension_numbers<[1], [0], [0], [1], [0, 0, 1, 1], [], []>} : vector<32x192xbf16>, vector<192x128xbf16>, vector<32x128xf32> -> vector<32x128xf32>
    %cst_41 = arith.constant dense<0.000000e+00> : vector<128xf32>
    %105 = vector.multi_reduction <add>, %104, %cst_41 [0] : vector<32x128xf32> to vector<128xf32>
    %106 = vector.shape_cast %105 : vector<128xf32> to vector<1x128xf32>
    %c8_i32_42 = arith.constant 8 : i32
    %107 = tpu.dynamic_rotate %106 by %c8_i32_42 dim 1 : vector<1x128xf32>, i32 -> vector<1x128xf32>
    %108 = arith.addf %106, %107 : vector<1x128xf32>
    %c16_i32_43 = arith.constant 16 : i32
    %109 = tpu.dynamic_rotate %108 by %c16_i32_43 dim 1 : vector<1x128xf32>, i32 -> vector<1x128xf32>
    %110 = arith.addf %108, %109 : vector<1x128xf32>
    %c32_i32_44 = arith.constant 32 : i32
    %111 = tpu.dynamic_rotate %110 by %c32_i32_44 dim 1 : vector<1x128xf32>, i32 -> vector<1x128xf32>
    %112 = arith.addf %110, %111 : vector<1x128xf32>
    %c64_i32 = arith.constant 64 : i32
    %113 = tpu.dynamic_rotate %112 by %c64_i32 dim 1 : vector<1x128xf32>, i32 -> vector<1x128xf32>
    %114 = arith.addf %112, %113 : vector<1x128xf32>
    %cst_45 = arith.constant 5.120000e+02 : f32
    %115 = vector.broadcast %cst_45 : f32 to vector<1x128xf32>
    %116 = arith.divf %114, %115 : vector<1x128xf32>
    %117 = vector.broadcast %116 : vector<1x128xf32> to vector<32x128xf32>
    %118 = arith.subf %104, %117 : vector<32x128xf32>
    %119 = arith.mulf %118, %118 : vector<32x128xf32>
    %cst_46 = arith.constant dense<0.000000e+00> : vector<128xf32>
    %120 = vector.multi_reduction <add>, %119, %cst_46 [0] : vector<32x128xf32> to vector<128xf32>
    %121 = vector.shape_cast %120 : vector<128xf32> to vector<1x128xf32>
    %c8_i32_47 = arith.constant 8 : i32
    %122 = tpu.dynamic_rotate %121 by %c8_i32_47 dim 1 : vector<1x128xf32>, i32 -> vector<1x128xf32>
    %123 = arith.addf %121, %122 : vector<1x128xf32>
    %c16_i32_48 = arith.constant 16 : i32
    %124 = tpu.dynamic_rotate %123 by %c16_i32_48 dim 1 : vector<1x128xf32>, i32 -> vector<1x128xf32>
    %125 = arith.addf %123, %124 : vector<1x128xf32>
    %c32_i32_49 = arith.constant 32 : i32
    %126 = tpu.dynamic_rotate %125 by %c32_i32_49 dim 1 : vector<1x128xf32>, i32 -> vector<1x128xf32>
    %127 = arith.addf %125, %126 : vector<1x128xf32>
    %c64_i32_50 = arith.constant 64 : i32
    %128 = tpu.dynamic_rotate %127 by %c64_i32_50 dim 1 : vector<1x128xf32>, i32 -> vector<1x128xf32>
    %129 = arith.addf %127, %128 : vector<1x128xf32>
    %cst_51 = arith.constant 5.120000e+02 : f32
    %130 = vector.broadcast %cst_51 : f32 to vector<1x128xf32>
    %131 = arith.divf %129, %130 : vector<1x128xf32>
    %c2 = arith.constant 2 : index
    %c0_52 = arith.constant 0 : index
    %132 = vector.load %arg2[%c2, %c0_52] : memref<8x128xf32, #tpu.memory_space<vmem>>, vector<1x128xf32>
    %c3 = arith.constant 3 : index
    %c0_53 = arith.constant 0 : index
    %133 = vector.load %arg2[%c3, %c0_53] : memref<8x128xf32, #tpu.memory_space<vmem>>, vector<1x128xf32>
    %cst_54 = arith.constant 9.99999974E-6 : f32
    %134 = vector.broadcast %cst_54 : f32 to vector<1x128xf32>
    %135 = arith.addf %131, %134 : vector<1x128xf32>
    %136 = math.rsqrt %135 : vector<1x128xf32>
    %137 = vector.broadcast %136 : vector<1x128xf32> to vector<32x128xf32>
    %138 = arith.mulf %118, %137 : vector<32x128xf32>
    %139 = vector.broadcast %132 : vector<1x128xf32> to vector<32x128xf32>
    %140 = arith.mulf %138, %139 : vector<32x128xf32>
    %141 = vector.broadcast %133 : vector<1x128xf32> to vector<32x128xf32>
    %142 = arith.addf %140, %141 : vector<32x128xf32>
    %cst_55 = arith.constant 0.000000e+00 : f32
    %143 = vector.broadcast %cst_55 : f32 to vector<32x128xf32>
    %144 = arith.maximumf %142, %143 : vector<32x128xf32>
    %c31_i32_56 = arith.constant 31 : i32
    %145 = tpu.dynamic_rotate %144 by %c31_i32_56 dim 0 : vector<32x128xf32>, i32 -> vector<32x128xf32>
    %146 = arith.maximumf %144, %145 : vector<32x128xf32>
    %c0_57 = arith.constant 0 : index
    %c0_58 = arith.constant 0 : index
    %147 = vector.load %arg6[%c0_57, %c0_58] : memref<32x128xf32, #tpu.memory_space<vmem>>, vector<32x128xf32>
    tpu.vector_store %arg6[%c0_57, %c0_58], %146 {strides = array<i32>} : memref<32x128xf32, #tpu.memory_space<vmem>>, vector<32x128xf32>,
    %c0_59 = arith.constant 0 : index
    %c0_60 = arith.constant 0 : index
    %148 = tpu.strided_load %arg6[%c0_59, %c0_60] {strides = array<i32: 2, 1>} : memref<32x128xf32, #tpu.memory_space<vmem>>, vector<16x128xf32>
    %c120_i32 = arith.constant 120 : i32
    %149 = tpu.dynamic_rotate %148 by %c120_i32 dim 1 : vector<16x128xf32>, i32 -> vector<16x128xf32>
    %150 = arith.maximumf %148, %149 : vector<16x128xf32>
    %151 = tpu.iota {dimensions = array<i32: 0>} : vector<16x128xi32>
    %c8_i32_61 = arith.constant 8 : i32
    %c0_i32_62 = arith.constant 0 : i32
    %152 = arith.cmpi eq, %c8_i32_61, %c0_i32_62 : i32
    %c1_i32_63 = arith.constant 1 : i32
    %153 = arith.select %152, %c1_i32_63, %c8_i32_61 : i32
    %154 = vector.broadcast %153 : i32 to vector<16x128xi32>
    %155 = arith.remsi %151, %154 : vector<16x128xi32>
    %c0_i32_64 = arith.constant 0 : i32
    %156 = vector.broadcast %c0_i32_64 : i32 to vector<16x128xi32>
    %157 = arith.cmpi ne, %155, %156 : vector<16x128xi32>
    %c0_i32_65 = arith.constant 0 : i32
    %158 = vector.broadcast %c0_i32_65 : i32 to vector<16x128xi32>
    %159 = arith.cmpi slt, %155, %158 : vector<16x128xi32>
    %c0_i32_66 = arith.constant 0 : i32
    %160 = arith.cmpi slt, %153, %c0_i32_66 : i32
    %161 = vector.broadcast %160 : i1 to vector<16x128xi1>
    %162 = vector.broadcast %161 : vector<16x128xi1> to vector<16x128xi1>
    %163 = arith.xori %159, %162 : vector<16x128xi1>
    %164 = arith.andi %163, %157 : vector<16x128xi1>
    %165 = vector.broadcast %153 : i32 to vector<16x128xi32>
    %166 = arith.addi %155, %165 : vector<16x128xi32>
    %167 = arith.select %164, %166, %155 : vector<16x128xi1>, vector<16x128xi32>
    %c0_i32_67 = arith.constant 0 : i32
    %168 = vector.broadcast %c0_i32_67 : i32 to vector<16x128xi32>
    %169 = arith.cmpi eq, %167, %168 : vector<16x128xi32>
    %c1_i32_68 = arith.constant 1 : i32
    %170 = tpu.dynamic_rotate %150 by %c1_i32_68 dim 0 : vector<16x128xf32>, i32 -> vector<16x128xf32>
    %cst_69 = arith.constant 0.000000e+00 : f32
    %171 = vector.broadcast %cst_69 : f32 to vector<16x128xf32>
    %172 = arith.select %169, %171, %170 : vector<16x128xi1>, vector<16x128xf32>
    %c7_i32 = arith.constant 7 : i32
    %173 = vector.broadcast %c7_i32 : i32 to vector<16x128xi32>
    %174 = arith.cmpi eq, %167, %173 : vector<16x128xi32>
    %c15_i32_70 = arith.constant 15 : i32
    %175 = tpu.dynamic_rotate %150 by %c15_i32_70 dim 0 : vector<16x128xf32>, i32 -> vector<16x128xf32>
    %cst_71 = arith.constant 0.000000e+00 : f32
    %176 = vector.broadcast %cst_71 : f32 to vector<16x128xf32>
    %177 = arith.select %174, %176, %175 : vector<16x128xi1>, vector<16x128xf32>
    %178 = tpu.concatenate %172, %150, %177 in 1 : vector<16x128xf32>, vector<16x128xf32>, vector<16x128xf32> -> vector<16x384xf32>
    %c2_72 = arith.constant 2 : index
    %c0_73 = arith.constant 0 : index
    %c0_74 = arith.constant 0 : index
    %179 = vector.load %arg1[%c2_72, %c0_73, %c0_74] : memref<4x384x128xbf16, #tpu.memory_space<vmem>>, vector<1x384x128xbf16>
    %180 = vector.shape_cast %179 : vector<1x384x128xbf16> to vector<384x128xbf16>
    %181 = arith.truncf %178 : vector<16x384xf32> to vector<16x384xbf16>
    %cst_75 = arith.constant dense<0.000000e+00> : vector<16x128xf32>
    %182 = tpu.matmul %181, %180, %cst_75 {dimension_numbers = #tpu.dot_dimension_numbers<[1], [0], [0], [1], [0, 0, 1, 1], [], []>} : vector<16x384xbf16>, vector<384x128xbf16>, vector<16x128xf32> -> vector<16x128xf32>
    %cst_76 = arith.constant dense<0.000000e+00> : vector<128xf32>
    %183 = vector.multi_reduction <add>, %182, %cst_76 [0] : vector<16x128xf32> to vector<128xf32>
    %184 = vector.shape_cast %183 : vector<128xf32> to vector<1x128xf32>
    %c16_i32_77 = arith.constant 16 : i32
    %185 = tpu.dynamic_rotate %184 by %c16_i32_77 dim 1 : vector<1x128xf32>, i32 -> vector<1x128xf32>
    %186 = arith.addf %184, %185 : vector<1x128xf32>
    %c32_i32_78 = arith.constant 32 : i32
    %187 = tpu.dynamic_rotate %186 by %c32_i32_78 dim 1 : vector<1x128xf32>, i32 -> vector<1x128xf32>
    %188 = arith.addf %186, %187 : vector<1x128xf32>
    %c64_i32_79 = arith.constant 64 : i32
    %189 = tpu.dynamic_rotate %188 by %c64_i32_79 dim 1 : vector<1x128xf32>, i32 -> vector<1x128xf32>
    %190 = arith.addf %188, %189 : vector<1x128xf32>
    %cst_80 = arith.constant 1.280000e+02 : f32
    %191 = vector.broadcast %cst_80 : f32 to vector<1x128xf32>
    %192 = arith.divf %190, %191 : vector<1x128xf32>
    %193 = vector.broadcast %192 : vector<1x128xf32> to vector<16x128xf32>
    %194 = arith.subf %182, %193 : vector<16x128xf32>
    %195 = arith.mulf %194, %194 : vector<16x128xf32>
    %cst_81 = arith.constant dense<0.000000e+00> : vector<128xf32>
    %196 = vector.multi_reduction <add>, %195, %cst_81 [0] : vector<16x128xf32> to vector<128xf32>
    %197 = vector.shape_cast %196 : vector<128xf32> to vector<1x128xf32>
    %c16_i32_82 = arith.constant 16 : i32
    %198 = tpu.dynamic_rotate %197 by %c16_i32_82 dim 1 : vector<1x128xf32>, i32 -> vector<1x128xf32>
    %199 = arith.addf %197, %198 : vector<1x128xf32>
    %c32_i32_83 = arith.constant 32 : i32
    %200 = tpu.dynamic_rotate %199 by %c32_i32_83 dim 1 : vector<1x128xf32>, i32 -> vector<1x128xf32>
    %201 = arith.addf %199, %200 : vector<1x128xf32>
    %c64_i32_84 = arith.constant 64 : i32
    %202 = tpu.dynamic_rotate %201 by %c64_i32_84 dim 1 : vector<1x128xf32>, i32 -> vector<1x128xf32>
    %203 = arith.addf %201, %202 : vector<1x128xf32>
    %cst_85 = arith.constant 1.280000e+02 : f32
    %204 = vector.broadcast %cst_85 : f32 to vector<1x128xf32>
    %205 = arith.divf %203, %204 : vector<1x128xf32>
    %c4 = arith.constant 4 : index
    %c0_86 = arith.constant 0 : index
    %206 = vector.load %arg2[%c4, %c0_86] : memref<8x128xf32, #tpu.memory_space<vmem>>, vector<1x128xf32>
    %c5 = arith.constant 5 : index
    %c0_87 = arith.constant 0 : index
    %207 = vector.load %arg2[%c5, %c0_87] : memref<8x128xf32, #tpu.memory_space<vmem>>, vector<1x128xf32>
    %cst_88 = arith.constant 9.99999974E-6 : f32
    %208 = vector.broadcast %cst_88 : f32 to vector<1x128xf32>
    %209 = arith.addf %205, %208 : vector<1x128xf32>
    %210 = math.rsqrt %209 : vector<1x128xf32>
    %211 = vector.broadcast %210 : vector<1x128xf32> to vector<16x128xf32>
    %212 = arith.mulf %194, %211 : vector<16x128xf32>
    %213 = vector.broadcast %206 : vector<1x128xf32> to vector<16x128xf32>
    %214 = arith.mulf %212, %213 : vector<16x128xf32>
    %215 = vector.broadcast %207 : vector<1x128xf32> to vector<16x128xf32>
    %216 = arith.addf %214, %215 : vector<16x128xf32>
    %cst_89 = arith.constant 0.000000e+00 : f32
    %217 = vector.broadcast %cst_89 : f32 to vector<16x128xf32>
    %218 = arith.maximumf %216, %217 : vector<16x128xf32>
    %c15_i32_90 = arith.constant 15 : i32
    %219 = tpu.dynamic_rotate %218 by %c15_i32_90 dim 0 : vector<16x128xf32>, i32 -> vector<16x128xf32>
    %220 = arith.maximumf %218, %219 : vector<16x128xf32>
    %c0_91 = arith.constant 0 : index
    %c0_92 = arith.constant 0 : index
    %221 = vector.load %arg6[%c0_91, %c0_92] : memref<32x128xf32, #tpu.memory_space<vmem>>, vector<16x128xf32>
    tpu.vector_store %arg6[%c0_91, %c0_92], %220 {strides = array<i32>} : memref<32x128xf32, #tpu.memory_space<vmem>>, vector<16x128xf32>,
    %c0_93 = arith.constant 0 : index
    %c0_94 = arith.constant 0 : index
    %222 = tpu.strided_load %arg6[%c0_93, %c0_94] {strides = array<i32: 2, 1>} : memref<32x128xf32, #tpu.memory_space<vmem>>, vector<8x128xf32>
    %c112_i32 = arith.constant 112 : i32
    %223 = tpu.dynamic_rotate %222 by %c112_i32 dim 1 : vector<8x128xf32>, i32 -> vector<8x128xf32>
    %224 = arith.maximumf %222, %223 : vector<8x128xf32>
    %225 = tpu.iota {dimensions = array<i32: 0>} : vector<8x128xi32>
    %c4_i32_95 = arith.constant 4 : i32
    %c0_i32_96 = arith.constant 0 : i32
    %226 = arith.cmpi eq, %c4_i32_95, %c0_i32_96 : i32
    %c1_i32_97 = arith.constant 1 : i32
    %227 = arith.select %226, %c1_i32_97, %c4_i32_95 : i32
    %228 = vector.broadcast %227 : i32 to vector<8x128xi32>
    %229 = arith.remsi %225, %228 : vector<8x128xi32>
    %c0_i32_98 = arith.constant 0 : i32
    %230 = vector.broadcast %c0_i32_98 : i32 to vector<8x128xi32>
    %231 = arith.cmpi ne, %229, %230 : vector<8x128xi32>
    %c0_i32_99 = arith.constant 0 : i32
    %232 = vector.broadcast %c0_i32_99 : i32 to vector<8x128xi32>
    %233 = arith.cmpi slt, %229, %232 : vector<8x128xi32>
    %c0_i32_100 = arith.constant 0 : i32
    %234 = arith.cmpi slt, %227, %c0_i32_100 : i32
    %235 = vector.broadcast %234 : i1 to vector<8x128xi1>
    %236 = vector.broadcast %235 : vector<8x128xi1> to vector<8x128xi1>
    %237 = arith.xori %233, %236 : vector<8x128xi1>
    %238 = arith.andi %237, %231 : vector<8x128xi1>
    %239 = vector.broadcast %227 : i32 to vector<8x128xi32>
    %240 = arith.addi %229, %239 : vector<8x128xi32>
    %241 = arith.select %238, %240, %229 : vector<8x128xi1>, vector<8x128xi32>
    %c0_i32_101 = arith.constant 0 : i32
    %242 = vector.broadcast %c0_i32_101 : i32 to vector<8x128xi32>
    %243 = arith.cmpi eq, %241, %242 : vector<8x128xi32>
    %c1_i32_102 = arith.constant 1 : i32
    %244 = tpu.dynamic_rotate %224 by %c1_i32_102 dim 0 : vector<8x128xf32>, i32 -> vector<8x128xf32>
    %cst_103 = arith.constant 0.000000e+00 : f32
    %245 = vector.broadcast %cst_103 : f32 to vector<8x128xf32>
    %246 = arith.select %243, %245, %244 : vector<8x128xi1>, vector<8x128xf32>
    %c3_i32 = arith.constant 3 : i32
    %247 = vector.broadcast %c3_i32 : i32 to vector<8x128xi32>
    %248 = arith.cmpi eq, %241, %247 : vector<8x128xi32>
    %c7_i32_104 = arith.constant 7 : i32
    %249 = tpu.dynamic_rotate %224 by %c7_i32_104 dim 0 : vector<8x128xf32>, i32 -> vector<8x128xf32>
    %cst_105 = arith.constant 0.000000e+00 : f32
    %250 = vector.broadcast %cst_105 : f32 to vector<8x128xf32>
    %251 = arith.select %248, %250, %249 : vector<8x128xi1>, vector<8x128xf32>
    %252 = tpu.concatenate %246, %224, %251 in 1 : vector<8x128xf32>, vector<8x128xf32>, vector<8x128xf32> -> vector<8x384xf32>
    %c3_106 = arith.constant 3 : index
    %c0_107 = arith.constant 0 : index
    %c0_108 = arith.constant 0 : index
    %253 = vector.load %arg1[%c3_106, %c0_107, %c0_108] : memref<4x384x128xbf16, #tpu.memory_space<vmem>>, vector<1x384x128xbf16>
    %254 = vector.shape_cast %253 : vector<1x384x128xbf16> to vector<384x128xbf16>
    %255 = arith.truncf %252 : vector<8x384xf32> to vector<8x384xbf16>
    %cst_109 = arith.constant dense<0.000000e+00> : vector<8x128xf32>
    %256 = tpu.matmul %255, %254, %cst_109 {dimension_numbers = #tpu.dot_dimension_numbers<[1], [0], [0], [1], [0, 0, 1, 1], [], []>} : vector<8x384xbf16>, vector<384x128xbf16>, vector<8x128xf32> -> vector<8x128xf32>
    %cst_110 = arith.constant dense<0.000000e+00> : vector<128xf32>
    %257 = vector.multi_reduction <add>, %256, %cst_110 [0] : vector<8x128xf32> to vector<128xf32>
    %258 = vector.shape_cast %257 : vector<128xf32> to vector<1x128xf32>
    %c32_i32_111 = arith.constant 32 : i32
    %259 = tpu.dynamic_rotate %258 by %c32_i32_111 dim 1 : vector<1x128xf32>, i32 -> vector<1x128xf32>
    %260 = arith.addf %258, %259 : vector<1x128xf32>
    %c64_i32_112 = arith.constant 64 : i32
    %261 = tpu.dynamic_rotate %260 by %c64_i32_112 dim 1 : vector<1x128xf32>, i32 -> vector<1x128xf32>
    %262 = arith.addf %260, %261 : vector<1x128xf32>
    %cst_113 = arith.constant 3.200000e+01 : f32
    %263 = vector.broadcast %cst_113 : f32 to vector<1x128xf32>
    %264 = arith.divf %262, %263 : vector<1x128xf32>
    %265 = vector.broadcast %264 : vector<1x128xf32> to vector<8x128xf32>
    %266 = arith.subf %256, %265 : vector<8x128xf32>
    %267 = arith.mulf %266, %266 : vector<8x128xf32>
    %cst_114 = arith.constant dense<0.000000e+00> : vector<128xf32>
    %268 = vector.multi_reduction <add>, %267, %cst_114 [0] : vector<8x128xf32> to vector<128xf32>
    %269 = vector.shape_cast %268 : vector<128xf32> to vector<1x128xf32>
    %c32_i32_115 = arith.constant 32 : i32
    %270 = tpu.dynamic_rotate %269 by %c32_i32_115 dim 1 : vector<1x128xf32>, i32 -> vector<1x128xf32>
    %271 = arith.addf %269, %270 : vector<1x128xf32>
    %c64_i32_116 = arith.constant 64 : i32
    %272 = tpu.dynamic_rotate %271 by %c64_i32_116 dim 1 : vector<1x128xf32>, i32 -> vector<1x128xf32>
    %273 = arith.addf %271, %272 : vector<1x128xf32>
    %cst_117 = arith.constant 3.200000e+01 : f32
    %274 = vector.broadcast %cst_117 : f32 to vector<1x128xf32>
    %275 = arith.divf %273, %274 : vector<1x128xf32>
    %c6 = arith.constant 6 : index
    %c0_118 = arith.constant 0 : index
    %276 = vector.load %arg2[%c6, %c0_118] : memref<8x128xf32, #tpu.memory_space<vmem>>, vector<1x128xf32>
    %c7 = arith.constant 7 : index
    %c0_119 = arith.constant 0 : index
    %277 = vector.load %arg2[%c7, %c0_119] : memref<8x128xf32, #tpu.memory_space<vmem>>, vector<1x128xf32>
    %cst_120 = arith.constant 9.99999974E-6 : f32
    %278 = vector.broadcast %cst_120 : f32 to vector<1x128xf32>
    %279 = arith.addf %275, %278 : vector<1x128xf32>
    %280 = math.rsqrt %279 : vector<1x128xf32>
    %281 = vector.broadcast %280 : vector<1x128xf32> to vector<8x128xf32>
    %282 = arith.mulf %266, %281 : vector<8x128xf32>
    %283 = vector.broadcast %276 : vector<1x128xf32> to vector<8x128xf32>
    %284 = arith.mulf %282, %283 : vector<8x128xf32>
    %285 = vector.broadcast %277 : vector<1x128xf32> to vector<8x128xf32>
    %286 = arith.addf %284, %285 : vector<8x128xf32>
    %cst_121 = arith.constant 0.000000e+00 : f32
    %287 = vector.broadcast %cst_121 : f32 to vector<8x128xf32>
    %288 = arith.maximumf %286, %287 : vector<8x128xf32>
    %c7_i32_122 = arith.constant 7 : i32
    %289 = tpu.dynamic_rotate %288 by %c7_i32_122 dim 0 : vector<8x128xf32>, i32 -> vector<8x128xf32>
    %290 = arith.maximumf %288, %289 : vector<8x128xf32>
    %c6_i32 = arith.constant 6 : i32
    %291 = tpu.dynamic_rotate %288 by %c6_i32 dim 0 : vector<8x128xf32>, i32 -> vector<8x128xf32>
    %292 = arith.maximumf %290, %291 : vector<8x128xf32>
    %c5_i32 = arith.constant 5 : i32
    %293 = tpu.dynamic_rotate %288 by %c5_i32 dim 0 : vector<8x128xf32>, i32 -> vector<8x128xf32>
    %294 = arith.maximumf %292, %293 : vector<8x128xf32>
    %c0_123 = arith.constant 0 : index
    %c0_124 = arith.constant 0 : index
    %295 = vector.load %arg6[%c0_123, %c0_124] : memref<32x128xf32, #tpu.memory_space<vmem>>, vector<8x128xf32>
    tpu.vector_store %arg6[%c0_123, %c0_124], %294 {strides = array<i32>} : memref<32x128xf32, #tpu.memory_space<vmem>>, vector<8x128xf32>,
    %c0_125 = arith.constant 0 : index
    %c0_126 = arith.constant 0 : index
    %296 = tpu.strided_load %arg6[%c0_125, %c0_126] {strides = array<i32: 4, 1>} : memref<32x128xf32, #tpu.memory_space<vmem>>, vector<2x128xf32>
    %297 = vector.extract_strided_slice %296 {offsets = [0, 0], sizes = [2, 32], strides = [1, 1]} : vector<2x128xf32> to vector<2x32xf32>
    %298 = vector.extract_strided_slice %296 {offsets = [0, 32], sizes = [2, 32], strides = [1, 1]} : vector<2x128xf32> to vector<2x32xf32>
    %299 = arith.maximumf %297, %298 : vector<2x32xf32>
    %300 = vector.extract_strided_slice %296 {offsets = [0, 64], sizes = [2, 32], strides = [1, 1]} : vector<2x128xf32> to vector<2x32xf32>
    %301 = arith.maximumf %299, %300 : vector<2x32xf32>
    %302 = vector.extract_strided_slice %296 {offsets = [0, 96], sizes = [2, 32], strides = [1, 1]} : vector<2x128xf32> to vector<2x32xf32>
    %303 = arith.maximumf %301, %302 : vector<2x32xf32>
    %c0_127 = arith.constant 0 : index
    %c0_128 = arith.constant 0 : index
    %304 = vector.load %arg3[%c0_127, %c0_128] : memref<32x10xf32, #tpu.memory_space<vmem>>, vector<32x10xf32>
    %cst_129 = arith.constant dense<0.000000e+00> : vector<2x10xf32>
    %305 = tpu.matmul %303, %304, %cst_129 {dimension_numbers = #tpu.dot_dimension_numbers<[1], [0], [0], [1], [0, 0, 1, 1], [], []>} : vector<2x32xf32>, vector<32x10xf32>, vector<2x10xf32> -> vector<2x10xf32>
    %c0_130 = arith.constant 0 : index
    %c0_131 = arith.constant 0 : index
    %306 = vector.load %arg4[%c0_130, %c0_131] : memref<1x10xf32, #tpu.memory_space<vmem>>, vector<1x10xf32>
    %307 = vector.broadcast %306 : vector<1x10xf32> to vector<2x10xf32>
    %308 = arith.addf %305, %307 : vector<2x10xf32>
    %c0_132 = arith.constant 0 : index
    %c0_133 = arith.constant 0 : index
    %309 = vector.load %arg5[%c0_132, %c0_133] : memref<2x10xf32, #tpu.memory_space<vmem>>, vector<2x10xf32>
    tpu.vector_store %arg5[%c0_132, %c0_133], %308 {strides = array<i32>} : memref<2x10xf32, #tpu.memory_space<vmem>>, vector<2x10xf32>,
    return
  }
}

</mosaic_0001>

<bundles_post_ra>
// kernel: cnn_bn_forward.1
= control target key start
LH: loop header
LB: loop body
LE: loop exit
PB: predicated region body
PF: predicated region fallthrough
CT: control target
= control target key end

     0   :  { %10 = vsyncpa [#allocation4], 0  ;;  %s2497_s0 = inlined_call_operand.vmem [shape: f32[32,64], index: 0, kind: input, shape index: {}]   ;;  %s2498_s1 = inlined_call_operand.hbm [shape: bf16[4,384,128], index: 1, kind: input, shape index: {}]   ;;  %s2499_s2 = inlined_call_operand.vmem [shape: f32[8,128], index: 2, kind: input, shape index: {}]   ;;  %s2500_s3 = inlined_call_operand.vmem [shape: f32[32,10], index: 3, kind: input, shape index: {}]   ;;  %s2501_s4 = inlined_call_operand.vmem [shape: f32[1,10], index: 4, kind: input, shape index: {}]   ;;  %s2502_s5 = inlined_call_operand.hbm [shape: f32[2,10], index: 5, kind: output, shape index: {}]  }
   0x1   :  { %11 = vsyncpa [#allocation5], 0  ;;  %s2051_s18 = smov [#allocation3]   ;;  %s2003_s22 = scalar_lea.hbm %s2498_s1, 12288 }
   0x2   :  { %s19_s19 = sshll.u32 %s2051_s18, 4  ;;  %p2004_p0 = scmp.ne.s32.totalorder %s2498_s1, %s2003_s22  ;;  %s20_s19 = int_to_ptr.vmem [resolvable:$true] %s19_s19 }
   0x3   :  { %p2007_p1 = scmp.lt.u32.totalorder %s2003_s22, %s2498_s1 }
   0x5   :  { %p2009_p2 = pnand %p2007_p1, %p2004_p0 }
   0x7   :  { %2012 = shalt.err (!%p2009_p2)
}
   0x8   :  { %s2013_s27 = scalar_lea.vmem %s20_s19, 12288  ;;  %p2018_p4 = scmp.lt.s32.totalorder %s20_s19, %s20_s19 }
   0x9   :  { %p2014_p3 = scmp.ne.s32.totalorder %s20_s19, %s2013_s27  ;;  %p2019_p5 = scmp.lt.s32.totalorder %s2013_s27, %s2013_s27 }
   0xb   :  { %p2020_p6 = por %p2019_p5, %p2018_p4 }
   0xd   :  { %p2021_p7 = pnand %p2020_p6, %p2014_p3 }
   0xf   :  { %2024 = shalt.err (!%p2021_p7)
}
  0x10   :  { %s2052_s28 = smov 64   ;;  %s2053_s29 = smov 4  }
  0x11   :  { %25 = dma.hbm_to_vmem [thread:$0]  %s2498_s1, 12288, %s20_s19, [#allocation4], %s2052_s28, %s2052_s28, %s2053_s29  }
  0x12   :  { %2047 = dma.done.wait [#allocation4], 12288  }
  0x13   :  { %2048 = vsyncadd [#allocation4], 4294955008  ;;  %v40_v0 = vlaneseq  ;;  %v2054_v1 = vmov 0   ;;  %v36_v5 = vld [vmem:[%s2497_s0] sm:$0xff]  ;;  %v37_v6 = vld [vmem:[%s2497_s0 + $0x8] sm:$0xff]  ;;  %vm143_vm3 = vcmask 523264  }
  0x14   :  { %254 = vmatprep.subr.bf16.mxu0 %v2054_v1  ;;  %616 = vmatprep.subr.bf16.mxu1 %v2054_v1  ;;  %v38_v7 = vld [vmem:[%s2497_s0 + $0x10] sm:$0xff]  ;;  %v98_v10 = vrot.slane %v37_v6, 7  ;;  %v115_v11 = vrot.slane %v37_v6, 1  ;;  %v1898_v12 = vpack.i.bf16 %v37_v6, %v36_v5  ;;  %v97_v13 = vrot.slane %v36_v5, 7  ;;  %v39_v14 = vld [vmem:[%s2497_s0 + $0x18] sm:$0xff]  ;;  %v1923_v18 = vld [vmem:[#allocation3] sm:$0xff]  }
  0x15   :  { %v2114_v2 = vshrl.u32 %v40_v0, 7  ;;  %v114_v15 = vrot.slane %v36_v5, 1  ;;  %v100_v16 = vrot.slane %v39_v14, 7  ;;  %v117_v17 = vrot.slane %v39_v14, 1  ;;  %255 = vmatpush1.bf16.msra.mxu0 %v1923_v18  ;;  %v1924_v23 = vld [vmem:[#allocation3 + $0x8] sm:$0xff]   ;;  %v1925_v35 = vld [vmem:[#allocation3 + $0x10] sm:$0xff]  }
  0x16   :  { %1899 = vrot.lane.b32.xlu0 %v1898_v12, %s2052_s28  ;;  %v1903_v19 = vpack.i.bf16 %v39_v14, %v38_v7  ;;  %v99_v20 = vrot.slane %v38_v7, 7  ;;  %v116_v21 = vrot.slane %v38_v7, 1  ;;  %256 = vmatprep.subr.bf16.mxu0 %v2054_v1  ;;  %v1926_v38 = vld [vmem:[#allocation3 + $0x18] sm:$0xff]   ;;  %v1927_v39 = vld [vmem:[#allocation3 + $0x20] sm:$0xff]   ;;  %v1928_v40 = vld [vmem:[#allocation3 + $0x28] sm:$0xff]   ;;  %vm316_vm7 = vcmask 1048064  }
  0x17   :  { %v2117_v3 = vadd.s32 8, %v2114_v2  ;;  %v44_v4 = vadd.s32 24, %v2114_v2  ;;  %vm118_vm0 = vcmp.lt.s32.totalorder %v2114_v2, 7  ;;  %vm101_vm1 = vcmp.lt.s32.totalorder %v2114_v2, 1  ;;  %v1929_v41 = vld [vmem:[#allocation3 + $0x30] sm:$0xff]   ;;  %v1930_v42 = vld [vmem:[#allocation3 + $0x38] sm:$0xff]  }
  0x18   :  { %v104_v22 = vsel %vm101_vm1, %v97_v13, %v98_v10  ;;  %v121_v25 = vsel %vm118_vm0, %v114_v15, %v115_v11  ;;  %v105_v26 = vsel %vm101_vm1, %v100_v16, %v97_v13  ;;  %v122_v27 = vsel %vm118_vm0, %v117_v17, %v114_v15  ;;  %v1931_v43 = vld [vmem:[#allocation3 + $0x40] sm:$0xff]   ;;  %v1932_v44 = vld [vmem:[#allocation3 + $0x48] sm:$0xff]   ;;  %v1933_v45 = vld [vmem:[#allocation3 + $0x50] sm:$0xff]   ;;  %s2055_s0 = smov 68   ;;  %s2056_s14 = smov 72  }
  0x19   :  { %v56_v8 = vand.u32 15, %v2117_v3  ;;  %v70_v9 = vand.u32 15, %v44_v4  ;;  %v120_v28 = vsel %vm118_vm0, %v115_v11, %v116_v21  ;;  %v119_v29 = vsel %vm118_vm0, %v116_v21, %v117_v17  ;;  %257 = vmatpush1.bf16.msra.mxu0 %v1924_v23  ;;  %v1934_v46 = vld [vmem:[#allocation3 + $0x58] sm:$0xff]   ;;  %s2057_s15 = smov 80   ;;  %s2058_s16 = smov 96  }
  0x1a   :  { %v102_v30 = vsel %vm101_vm1, %v99_v20, %v100_v16  ;;  %v103_v32 = vsel %vm101_vm1, %v98_v10, %v99_v20  ;;  %1904 = vrot.lane.b32.xlu0 %v1903_v19, %s2052_s28  ;;  %258 = vmatprep.subr.bf16.mxu0 %v2054_v1  ;;  %v49_v47 = vand.u32 15, %v2114_v2  ;;  %v43_v48 = vadd.s32 16, %v2114_v2  ;;  %s2059_s21 = smov 8   ;;  %s2060_s22 = smov 16  }
  0x1b   :  { %vm2138_vm2 = vcmp.eq.s32.totalorder %v56_v8, 15  ;;  %vm2160_vm4 = vcmp.eq.s32.totalorder %v70_v9, 15  ;;  %s2061_s23 = smov 32   ;;  %vm2063_vm8 = vmmov 0   ;;  %s2064_s29 = smov 120  }
  0x1c   :  { %v124_v31 = vsel %vm2138_vm2, 0.0, %v120_v28  ;;  %v126_v36 = vsel %vm2160_vm4, 0.0, %v122_v27  ;;  %vm2179_vm5 = vcmp.eq.s32.totalorder %v49_v47, 0  ;;  %v63_v50 = vand.u32 15, %v43_v48  ;;  %s2065_s1 = smov 112  }
  0x1d   :  { %v173_v33 = vpack.c.bf16 %v124_v31, %v121_v25  ;;  %v175_v37 = vpack.c.bf16 %v126_v36, %v119_v29  ;;  %259 = vmatpush1.bf16.msra.mxu0 %v1925_v35  ;;  %v106_v52 = vsel %vm2179_vm5, 0.0, %v105_v26 }
  0x1e   :  { %260 = vmatprep.subr.bf16.mxu0 %v2054_v1  ;;  %vm2185_vm6 = vcmp.eq.s32.totalorder %v63_v50, 0 }
  0x1f   :  { %1657 = vmatprep.mubr.msk.bf16.mxu0 %vm143_vm3, %v173_v33  ;;  %v108_v60 = vsel %vm2185_vm6, 0.0, %v103_v32 }
  0x21   :  { %261 = vmatpush1.bf16.msra.mxu0 %v1926_v38 }
  0x22   :  { %262 = vmatprep.subr.bf16.mxu0 %v2054_v1 }
  0x25   :  { %263 = vmatpush1.bf16.msra.mxu0 %v1927_v39 }
  0x26   :  { %264 = vmatprep.subr.bf16.mxu0 %v2054_v1 }
  0x29   :  { %265 = vmatpush1.bf16.msra.mxu0 %v1928_v40 }
  0x2a   :  { %266 = vmatprep.subr.bf16.mxu0 %v2054_v1 }
  0x2d   :  { %267 = vmatpush1.bf16.msra.mxu0 %v1929_v41 }
  0x2e   :  { %268 = vmatprep.subr.bf16.mxu0 %v2054_v1 }
  0x31   :  { %269 = vmatpush1.bf16.msra.mxu0 %v1930_v42 }
  0x32   :  { %270 = vmatprep.subr.bf16.mxu0 %v2054_v1 }
  0x35   :  { %271 = vmatpush1.bf16.msra.mxu0 %v1931_v43 }
  0x36   :  { %272 = vmatprep.subr.bf16.mxu0 %v2054_v1 }
  0x39   :  { %273 = vmatpush1.bf16.msra.mxu0 %v1932_v44 }
  0x3a   :  { %274 = vmatprep.subr.bf16.mxu0 %v2054_v1 }
  0x3d   :  { %275 = vmatpush1.bf16.msra.mxu0 %v1933_v45 }
  0x3e   :  { %276 = vmatprep.subr.bf16.mxu0 %v2054_v1 }
  0x41   :  { %277 = vmatpush1.bf16.msra.mxu0 %v1934_v46 }
  0x88   :  { %v1900_v51 = vpop.permute.xlu0 %1899 }
  0x89   :  { %v1902_v53 = vunpack.i.h.bf16 %v1900_v51  ;;  %v1901_v54 = vunpack.i.l.bf16 %v1900_v51 }
  0x8b   :  { %v144_v56 = vsel %vm143_vm3, %v106_v52, %v1901_v54  ;;  %v145_v57 = vsel %vm143_vm3, %v104_v22, %v1902_v53  ;;  %v2227_v52 = vsub.s32 0, %v2114_v2 }
  0x8c   :  { %v172_v58 = vpack.c.bf16 %v145_v57, %v144_v56  ;;  %v1905_v59 = vpop.permute.xlu0 %1904 }
  0x8d   :  { %v1907_v61 = vunpack.i.h.bf16 %v1905_v59  ;;  %v1906_v62 = vunpack.i.l.bf16 %v1905_v59 }
  0x8e   :  { %287 = vmatmul.mubr.bf16.vlgmr.msra.gmra.mrb[0].mxu0 %v172_v58 }
  0x8f   :  { %1658 = vmatprep.mubr.msk.bf16.mxu0 %vm143_vm3, %v175_v37  ;;  %v146_v63 = vsel %vm143_vm3, %v108_v60, %v1906_v62  ;;  %v147_v0 = vsel %vm143_vm3, %v102_v30, %v1907_v61 }
  0x90   :  { %v174_v4 = vpack.c.bf16 %v147_v0, %v146_v63 }
  0x96   :  { %295 = vmatmul.mubr.bf16.gmra.mrb[4].mxu0 %v174_v4 }
 0x161   :  { %v2196_v5 = vpop.f32.mrb[0].mxu0 }
 0x162   :  { %v290_v6 = vpop.f32.mrb[1].mxu0  ;;  %v303_v8 = vsel %vm143_vm3, %v2196_v5, 0.0 }
 0x163   :  { %v2198_v7 = vpop.f32.mrb[2].mxu0 }
 0x164   :  { %v304_v9 = vsel %vm143_vm3, %v2198_v7, 0.0  ;;  %v293_v10 = vpop.f32.mrb[3].mxu0 }
 0x165   :  { %v305_v11 = vadd.f32 %v304_v9, %v303_v8 }
 0x169   :  { %v296_v12 = vpop.f32.mrb[4].mxu0 }
 0x16a   :  { %v306_v13 = vsel %vm143_vm3, %v296_v12, 0.0  ;;  %v298_v14 = vpop.f32.mrb[5].mxu0 }
 0x16b   :  { %v307_v15 = vadd.f32 %v306_v13, %v305_v11  ;;  %v299_v16 = vpop.f32.mrb[6].mxu0 }
 0x16c   :  { %v308_v17 = vsel %vm143_vm3, %v299_v16, 0.0  ;;  %v301_v18 = vpop.f32.mrb[7].mxu0 }
 0x16d   :  { %v309_v19 = vadd.f32 %v308_v17, %v307_v15 }
 0x16f   :  { %v310_v20 = vrot.slane %v309_v19, 4 }
 0x171   :  { %v311_v21 = vadd.f32 %v310_v20, %v309_v19 }
 0x173   :  { %v312_v22 = vrot.slane %v311_v21, 2 }
 0x175   :  { %v313_v23 = vadd.f32 %v312_v22, %v311_v21 }
 0x177   :  { %v314_v25 = vrot.slane %v313_v23, 1 }
 0x179   :  { %v315_v26 = vadd.f32 %v314_v25, %v313_v23 }
 0x17b   :  { %317 = vrot.lane.b32.xlu1 %v315_v26, %s2052_s28 }
 0x1ed   :  { %v318_v27 = vpop.permute.xlu1 %317 }
 0x1ee   :  { %v319_v28 = vsel %vm316_vm7, %v318_v27, %v315_v26 }
 0x1ef   :  { %320 = vrot.lane.b32.xlu1 %v319_v28, %s2052_s28 }
 0x261   :  { %v321_v29 = vpop.permute.xlu1 %320 }
 0x262   :  { %v322_v30 = vsel %vm316_vm7, %v321_v29, %v315_v26 }
 0x263   :  { %324 = vrot.lane.b32.xlu0 %v322_v30, %s2055_s0 }
 0x2d5   :  { %v325_v31 = vpop.permute.xlu0 %324 }
 0x2d6   :  { %v327_v32 = vadd.f32 %v325_v31, %v315_v26 }
 0x2d8   :  { %328 = vrot.lane.b32.xlu1 %v327_v32, %s2052_s28 }
 0x34a   :  { %v329_v33 = vpop.permute.xlu1 %328 }
 0x34b   :  { %v330_v35 = vsel %vm316_vm7, %v329_v33, %v327_v32 }
 0x34c   :  { %331 = vrot.lane.b32.xlu0 %v330_v35, %s2052_s28 }
 0x3be   :  { %v332_v36 = vpop.permute.xlu0 %331 }
 0x3bf   :  { %v333_v37 = vsel %vm316_vm7, %v332_v36, %v327_v32 }
 0x3c0   :  { %335 = vrot.lane.b32.xlu1 %v333_v37, %s2056_s14 }
 0x432   :  { %v336_v38 = vpop.permute.xlu1 %335 }
 0x433   :  { %v338_v39 = vadd.f32 %v336_v38, %v327_v32 }
 0x435   :  { %339 = vrot.lane.b32.xlu0 %v338_v39, %s2052_s28 }
 0x4a7   :  { %v340_v40 = vpop.permute.xlu0 %339 }
 0x4a8   :  { %v341_v41 = vsel %vm316_vm7, %v340_v40, %v338_v39 }
 0x4a9   :  { %342 = vrot.lane.b32.xlu1 %v341_v41, %s2052_s28  ;;  %v1935_v41 = vld [vmem:[#allocation3 + $0xc0] sm:$0xff]  }
 0x4aa   :  { %617 = vmatpush1.bf16.msra.mxu1 %v1935_v41 }
 0x4ab   :  { %618 = vmatprep.subr.bf16.mxu1 %v2054_v1 }
 0x51b   :  { %v343_v42 = vpop.permute.xlu1 %342 }
 0x51c   :  { %v344_v43 = vsel %vm316_vm7, %v343_v42, %v338_v39  ;;  %v1936_v42 = vld [vmem:[#allocation3 + $0xc8] sm:$0xff]  }
 0x51d   :  { %346 = vrot.lane.b32.xlu0 %v344_v43, %s2057_s15  ;;  %619 = vmatpush1.bf16.msra.mxu1 %v1936_v42  ;;  %v1937_v43 = vld [vmem:[#allocation3 + $0xd0] sm:$0xff]  }
 0x51e   :  { %620 = vmatprep.subr.bf16.mxu1 %v2054_v1 }
 0x521   :  { %621 = vmatpush1.bf16.msra.mxu1 %v1937_v43 }
 0x522   :  { %622 = vmatprep.subr.bf16.mxu1 %v2054_v1 }
 0x58f   :  { %v347_v44 = vpop.permute.xlu0 %346 }
 0x590   :  { %v349_v45 = vadd.f32 %v347_v44, %v338_v39  ;;  %v1938_v44 = vld [vmem:[#allocation3 + $0xd8] sm:$0xff]  }
 0x591   :  { %623 = vmatpush1.bf16.msra.mxu1 %v1938_v44 }
 0x592   :  { %350 = vrot.lane.b32.xlu1 %v349_v45, %s2052_s28  ;;  %624 = vmatprep.subr.bf16.mxu1 %v2054_v1 }
 0x604   :  { %v351_v46 = vpop.permute.xlu1 %350 }
 0x605   :  { %v352_v47 = vsel %vm316_vm7, %v351_v46, %v349_v45  ;;  %v1940_v46 = vld [vmem:[#allocation3 + $0xe8] sm:$0xff]  }
 0x606   :  { %353 = vrot.lane.b32.xlu0 %v352_v47, %s2052_s28  ;;  %v1941_v47 = vld [vmem:[#allocation3 + $0xf0] sm:$0xff]  }
 0x678   :  { %v354_v48 = vpop.permute.xlu0 %353 }
 0x679   :  { %v355_v50 = vsel %vm316_vm7, %v354_v48, %v349_v45  ;;  %v1942_v48 = vld [vmem:[#allocation3 + $0xf8] sm:$0xff]  }
 0x67a   :  { %357 = vrot.lane.b32.xlu1 %v355_v50, %s2058_s16  ;;  %v1943_v50 = vld [vmem:[#allocation3 + $0x100] sm:$0xff]  }
 0x6ec   :  { %v358_v51 = vpop.permute.xlu1 %357 }
 0x6ed   :  { %v360_v53 = vadd.f32 %v358_v51, %v349_v45  ;;  %v1939_v45 = vld [vmem:[#allocation3 + $0xe0] sm:$0xff]   ;;  %v1944_v51 = vld [vmem:[#allocation3 + $0x108] sm:$0xff]  }
 0x6ee   :  { %625 = vmatpush1.bf16.msra.mxu1 %v1939_v45 }
 0x6ef   :  { %v362_v54 = vmul.f32 0.001953125, %v360_v53  ;;  %626 = vmatprep.subr.bf16.mxu1 %v2054_v1  ;;  %v1945_v53 = vld [vmem:[#allocation3 + $0x110] sm:$0xff]  }
 0x6f1   :  { %v366_v56 = vrot.slane %v362_v54, %v2227_v52 }
 0x6f2   :  { %627 = vmatpush1.bf16.msra.mxu1 %v1940_v46 }
 0x6f3   :  { %v2231_v57 = vsub.f32 %v2196_v5, %v366_v56  ;;  %v2234_v58 = vsub.f32 %v2198_v7, %v366_v56  ;;  %v2236_v59 = vsub.f32 %v296_v12, %v366_v56  ;;  %v2238_v60 = vsub.f32 %v299_v16, %v366_v56  ;;  %628 = vmatprep.subr.bf16.mxu1 %v2054_v1 }
 0x6f5   :  { %v371_v61 = vmul.f32 %v2231_v57, %v2231_v57  ;;  %v372_v62 = vmul.f32 %v2234_v58, %v2234_v58  ;;  %v373_v63 = vmul.f32 %v2236_v59, %v2236_v59  ;;  %v374_v0 = vmul.f32 %v2238_v60, %v2238_v60 }
 0x6f6   :  { %629 = vmatpush1.bf16.msra.mxu1 %v1941_v47 }
 0x6f7   :  { %v375_v4 = vsel %vm143_vm3, %v371_v61, 0.0  ;;  %v376_v5 = vsel %vm143_vm3, %v372_v62, 0.0  ;;  %v378_v7 = vsel %vm143_vm3, %v373_v63, 0.0  ;;  %v380_v9 = vsel %vm143_vm3, %v374_v0, 0.0  ;;  %630 = vmatprep.subr.bf16.mxu1 %v2054_v1 }
 0x6f8   :  { %v377_v6 = vadd.f32 %v376_v5, %v375_v4  ;;  %v1946_v4 = vld [vmem:[#allocation3 + $0x118] sm:$0xff]   ;;  %v1659_v5 = vld [vmem:[%s2499_s2] ss:$0 sm:$0xff] }
 0x6fa   :  { %v379_v8 = vadd.f32 %v378_v7, %v377_v6  ;;  %631 = vmatpush1.bf16.msra.mxu1 %v1942_v48 }
 0x6fb   :  { %632 = vmatprep.subr.bf16.mxu1 %v2054_v1 }
 0x6fc   :  { %v381_v10 = vadd.f32 %v380_v9, %v379_v8  ;;  %v1660_v9 = vld [vmem:[%s2499_s2 + $0x1] ss:$0 sm:$0xff] }
 0x6fe   :  { %v382_v11 = vrot.slane %v381_v10, 4  ;;  %633 = vmatpush1.bf16.msra.mxu1 %v1943_v50 }
 0x6ff   :  { %634 = vmatprep.subr.bf16.mxu1 %v2054_v1 }
 0x700   :  { %v383_v12 = vadd.f32 %v382_v11, %v381_v10 }
 0x702   :  { %v384_v13 = vrot.slane %v383_v12, 2  ;;  %635 = vmatpush1.bf16.msra.mxu1 %v1944_v51 }
 0x703   :  { %636 = vmatprep.subr.bf16.mxu1 %v2054_v1 }
 0x704   :  { %v385_v14 = vadd.f32 %v384_v13, %v383_v12 }
 0x706   :  { %v386_v15 = vrot.slane %v385_v14, 1  ;;  %637 = vmatpush1.bf16.msra.mxu1 %v1945_v53 }
 0x707   :  { %638 = vmatprep.subr.bf16.mxu1 %v2054_v1 }
 0x708   :  { %v387_v16 = vadd.f32 %v386_v15, %v385_v14 }
 0x70a   :  { %388 = vrot.lane.b32.xlu0 %v387_v16, %s2052_s28  ;;  %639 = vmatpush1.bf16.msra.mxu1 %v1946_v4 }
 0x77c   :  { %v389_v17 = vpop.permute.xlu0 %388 }
 0x77d   :  { %v390_v18 = vsel %vm316_vm7, %v389_v17, %v387_v16 }
 0x77e   :  { %391 = vrot.lane.b32.xlu1 %v390_v18, %s2052_s28 }
 0x7f0   :  { %v392_v19 = vpop.permute.xlu1 %391 }
 0x7f1   :  { %v393_v20 = vsel %vm316_vm7, %v392_v19, %v387_v16 }
 0x7f2   :  { %395 = vrot.lane.b32.xlu0 %v393_v20, %s2055_s0 }
 0x864   :  { %v396_v21 = vpop.permute.xlu0 %395 }
 0x865   :  { %v398_v22 = vadd.f32 %v396_v21, %v387_v16 }
 0x867   :  { %399 = vrot.lane.b32.xlu1 %v398_v22, %s2052_s28 }
 0x8d9   :  { %v400_v23 = vpop.permute.xlu1 %399 }
 0x8da   :  { %v401_v25 = vsel %vm316_vm7, %v400_v23, %v398_v22 }
 0x8db   :  { %402 = vrot.lane.b32.xlu0 %v401_v25, %s2052_s28 }
 0x94d   :  { %v403_v26 = vpop.permute.xlu0 %402 }
 0x94e   :  { %v404_v27 = vsel %vm316_vm7, %v403_v26, %v398_v22 }
 0x94f   :  { %406 = vrot.lane.b32.xlu1 %v404_v27, %s2056_s14 }
 0x9c1   :  { %v407_v28 = vpop.permute.xlu1 %406 }
 0x9c2   :  { %v409_v29 = vadd.f32 %v407_v28, %v398_v22 }
 0x9c4   :  { %410 = vrot.lane.b32.xlu0 %v409_v29, %s2052_s28 }
 0xa36   :  { %v411_v30 = vpop.permute.xlu0 %410 }
 0xa37   :  { %v412_v31 = vsel %vm316_vm7, %v411_v30, %v409_v29 }
 0xa38   :  { %413 = vrot.lane.b32.xlu1 %v412_v31, %s2052_s28 }
 0xaaa   :  { %v414_v32 = vpop.permute.xlu1 %413 }
 0xaab   :  { %v415_v33 = vsel %vm316_vm7, %v414_v32, %v409_v29 }
 0xaac   :  { %417 = vrot.lane.b32.xlu0 %v415_v33, %s2057_s15 }
 0xb1e   :  { %v418_v35 = vpop.permute.xlu0 %417 }
 0xb1f   :  { %v420_v36 = vadd.f32 %v418_v35, %v409_v29 }
 0xb21   :  { %421 = vrot.lane.b32.xlu1 %v420_v36, %s2052_s28 }
 0xb93   :  { %v422_v37 = vpop.permute.xlu1 %421 }
 0xb94   :  { %v423_v38 = vsel %vm316_vm7, %v422_v37, %v420_v36 }
 0xb95   :  { %424 = vrot.lane.b32.xlu0 %v423_v38, %s2052_s28 }
 0xc07   :  { %v425_v39 = vpop.permute.xlu0 %424 }
 0xc08   :  { %v426_v40 = vsel %vm316_vm7, %v425_v39, %v420_v36 }
 0xc09   :  { %428 = vrot.lane.b32.xlu1 %v426_v40, %s2058_s16 }
 0xc7b   :  { %v429_v54 = vpop.permute.xlu1 %428 }
 0xc7c   :  { %v431_v56 = vadd.f32 %v429_v54, %v420_v36 }
 0xc7e   :  { %v432_v61 = vmul.f32 0.001953125, %v431_v56 }
 0xc80   :  { %v435_v62 = vadd.f32 1e-05, %v432_v61 }
 0xc82   :  { %1995 = vrsqrt.f32 %v435_v62 }
 0xc8c   :  { %v1996_v63 = vpop.eup %1995 }
 0xc8d   :  { %v440_v0 = vrot.slane %v1996_v63, %v2227_v52 }
 0xc8f   :  { %v443_v6 = vmul.f32 %v440_v0, %v2236_v59  ;;  %v444_v7 = vmul.f32 %v440_v0, %v2238_v60  ;;  %v441_v8 = vmul.f32 %v440_v0, %v2231_v57  ;;  %v442_v1 = vmul.f32 %v440_v0, %v2234_v58 }
 0xc91   :  { %v451_v10 = vmul.f32 %v1659_v5, %v443_v6  ;;  %v452_v11 = vmul.f32 %v1659_v5, %v444_v7  ;;  %v449_v12 = vmul.f32 %v1659_v5, %v441_v8  ;;  %v450_v13 = vmul.f32 %v1659_v5, %v442_v1 }
 0xc93   :  { %v459_v14 = vadd.f32 %v1660_v9, %v451_v10  ;;  %v460_v15 = vadd.f32 %v1660_v9, %v452_v11  ;;  %v457_v16 = vadd.f32 %v1660_v9, %v449_v12  ;;  %v458_v17 = vadd.f32 %v1660_v9, %v450_v13 }
 0xc95   :  { %v463_v59 = vmax.f32 %v459_v14, 0.0  ;;  %v464_v18 = vmax.f32 %v460_v15, 0.0  ;;  %v461_v60 = vmax.f32 %v457_v16, 0.0  ;;  %v462_v19 = vmax.f32 %v458_v17, 0.0 }
 0xc97   :  { %v468_v57 = vrot.slane %v464_v18, 7  ;;  %v480_v20 = vrot.slane %v464_v18, 1  ;;  %v1913_v58 = vpack.i.bf16 %v464_v18, %v463_v59  ;;  %v467_v21 = vrot.slane %v463_v59, 7 }
 0xc98   :  { %v466_v22 = vrot.slane %v462_v19, 7  ;;  %v1908_v23 = vpack.i.bf16 %v462_v19, %v461_v60  ;;  %v465_v25 = vrot.slane %v461_v60, 7  ;;  %v477_v26 = vrot.slane %v461_v60, 1 }
 0xc99   :  { %1914 = vrot.lane.b32.xlu1 %v1913_v58, %s2052_s28  ;;  %v478_v27 = vrot.slane %v462_v19, 1  ;;  %v479_v28 = vrot.slane %v463_v59, 1  ;;  %v469_v29 = vsel %vm101_vm1, %v467_v21, %v468_v57 }
 0xc9a   :  { %1909 = vrot.lane.b32.xlu0 %v1908_v23, %s2052_s28  ;;  %v471_v30 = vsel %vm101_vm1, %v465_v25, %v466_v22  ;;  %v472_v31 = vsel %vm101_vm1, %v468_v57, %v465_v25  ;;  %v484_v32 = vsel %vm118_vm0, %v480_v20, %v477_v26  ;;  %v470_v33 = vsel %vm101_vm1, %v466_v22, %v467_v21 }
 0xc9b   :  { %v482_v35 = vsel %vm118_vm0, %v478_v27, %v479_v28  ;;  %v483_v36 = vsel %vm118_vm0, %v477_v26, %v478_v27  ;;  %v481_v37 = vsel %vm118_vm0, %v479_v28, %v480_v20  ;;  %v488_v39 = vsel %vm2160_vm4, 0.0, %v484_v32 }
 0xc9c   :  { %v486_v38 = vsel %vm2138_vm2, 0.0, %v482_v35  ;;  %v537_v41 = vpack.c.bf16 %v488_v39, %v481_v37  ;;  %v475_v48 = vsel %vm2185_vm6, 0.0, %v470_v33  ;;  %v473_v24 = vsel %vm2179_vm5, 0.0, %v472_v31 }
 0xc9d   :  { %v535_v40 = vpack.c.bf16 %v486_v38, %v483_v36  ;;  %vm1628_vm4 = vcmask 74752  }
 0xc9f   :  { %1673 = vmatprep.mubr.msk.bf16.mxu1 %vm143_vm3, %v535_v40 }
 0xd0b   :  { %v1915_v42 = vpop.permute.xlu1 %1914 }
 0xd0c   :  { %v1917_v43 = vunpack.i.h.bf16 %v1915_v42  ;;  %v1916_v44 = vunpack.i.l.bf16 %v1915_v42  ;;  %v1910_v45 = vpop.permute.xlu0 %1909 }
 0xd0d   :  { %v1912_v46 = vunpack.i.h.bf16 %v1910_v45  ;;  %v1911_v47 = vunpack.i.l.bf16 %v1910_v45  ;;  %v1947_v45 = vld [vmem:[#allocation3 + $0x1c0] sm:$0xff]  }
 0xd0e   :  { %v507_v50 = vsel %vm143_vm3, %v475_v48, %v1916_v44  ;;  %v508_v34 = vsel %vm143_vm3, %v469_v29, %v1917_v43  ;;  %v2062_v48 = vmov 0.0   ;;  %1757 = vmatprep.subr.bf16.mxu0 %v1947_v45 }
 0xd0f   :  { %v505_v51 = vsel %vm143_vm3, %v473_v24, %v1911_v47  ;;  %v506_v53 = vsel %vm143_vm3, %v471_v30, %v1912_v46  ;;  %v536_v54 = vpack.c.bf16 %v508_v34, %v507_v50  ;;  %v1948_v46 = vld [vmem:[#allocation3 + $0x180] sm:$0xff]   ;;  %1824 = vmatprep.subr.bf16.mxu1 %v2062_v48  ;;  %v1950_v24 = vld [vmem:[#allocation3 + $0x1c8] sm:$0xff]  }
 0xd10   :  { %v534_v56 = vpack.c.bf16 %v506_v53, %v505_v51  ;;  %v1949_v47 = vld [vmem:[#allocation3 + $0x200] sm:$0xff]   ;;  %v1952_v50 = vld [vmem:[#allocation3 + $0x208] sm:$0xff]   ;;  %1758 = vmatpush3.bf16.msra.mxu0 %v1948_v46  ;;  %v1953_v51 = vld [vmem:[#allocation3 + $0x1d0] sm:$0xff]  }
 0xd11   :  { %v1951_v34 = vld [vmem:[#allocation3 + $0x188] sm:$0xff]   ;;  %1759 = vmatprep.subr.bf16.mxu0 %v1950_v24  ;;  %v1955_v53 = vld [vmem:[#allocation3 + $0x210] sm:$0xff]   ;;  %v789_v24 = vand.u32 7, %v2117_v3 }
 0xd12   :  { %649 = vmatmul.mubr.bf16.vlgmr.msra.gmra.mrb[0].mxu1 %v534_v56  ;;  %v1956_v56 = vld [vmem:[#allocation3 + $0x1d8] sm:$0xff]   ;;  %v1979_v3 = vld [vmem:[#allocation3 + $0x2d0] sm:$0xff]  }
 0xd13   :  { %1674 = vmatprep.mubr.msk.bf16.mxu1 %vm143_vm3, %v537_v41  ;;  %1825 = vmatpush3.bf16.msra.mxu1 %v1949_v47  ;;  %vm2383_vm9 = vcmp.ne.s32.totalorder %v789_v24, 0  ;;  %vm2391_vm11 = vcmp.ne.s32.totalorder %v789_v24, 7  ;;  %vm1554_vm3 = vcmask 261120  }
 0xd14   :  { %1826 = vmatprep.subr.bf16.mxu1 %v2062_v48  ;;  %1760 = vmatpush3.bf16.msra.mxu0 %v1951_v34 }
 0xd15   :  { %1761 = vmatprep.subr.bf16.mxu0 %v1953_v51 }
 0xd17   :  { %1827 = vmatpush3.bf16.msra.mxu1 %v1952_v50  ;;  %v782_v50 = vand.u32 7, %v2114_v2 }
 0xd18   :  { %1828 = vmatprep.subr.bf16.mxu1 %v2062_v48 }
 0xd19   :  { %vm2387_vm10 = vcmp.ne.s32.totalorder %v782_v50, 0  ;;  %vm2395_vm12 = vcmp.ne.s32.totalorder %v782_v50, 7 }
 0xd1a   :  { %657 = vmatmul.mubr.bf16.gmra.mrb[4].mxu1 %v536_v54  ;;  %v1954_v54 = vld [vmem:[#allocation3 + $0x190] sm:$0xff]   ;;  %vm1703_vm13 = vmpackc.low %vm2383_vm9, %vm2387_vm10 }
 0xd1b   :  { %1829 = vmatpush3.bf16.msra.mxu1 %v1955_v53  ;;  %1762 = vmatpush3.bf16.msra.mxu0 %v1954_v54  ;;  %vm1708_vm14 = vmpackc.low %vm2391_vm11, %vm2395_vm12 }
 0xd1c   :  { %1830 = vmatprep.subr.bf16.mxu1 %v2062_v48  ;;  %1763 = vmatprep.subr.bf16.mxu0 %v1956_v56 }
 0xd1d   :  { %1840 = vmatprep.mubr.msk.bf16.mxu1 %vm2063_vm8, %v2062_v48 }
 0xde5   :  { %v650_v61 = vpop.f32.mrb[0].mxu1 }
 0xde6   :  { %v652_v55 = vpop.f32.mrb[1].mxu1 }
 0xde7   :  { %v653_v62 = vpop.f32.mrb[2].mxu1  ;;  %v1957_v55 = vld [vmem:[#allocation3 + $0x198] sm:$0xff]  }
 0xde8   :  { %v665_v63 = vadd.f32 %v653_v62, %v650_v61  ;;  %v655_v49 = vpop.f32.mrb[3].mxu1  ;;  %1764 = vmatpush3.bf16.msra.mxu0 %v1957_v55  ;;  %v1975_v55 = vld [vmem:[#allocation3 + $0x248] sm:$0xff]  }
 0xde9   :  { %v1960_v49 = vld [vmem:[#allocation3 + $0x1a0] sm:$0xff]  }
 0xded   :  { %v658_v0 = vpop.f32.mrb[4].mxu1 }
 0xdee   :  { %v666_v4 = vadd.f32 %v665_v63, %v658_v0  ;;  %v660_v5 = vpop.f32.mrb[5].mxu1  ;;  %v1961_v63 = vld [vmem:[#allocation3 + $0x220] sm:$0xff]  }
 0xdef   :  { %v661_v6 = vpop.f32.mrb[6].mxu1  ;;  %v1963_v5 = vld [vmem:[#allocation3 + $0x1a8] sm:$0xff]  }
 0xdf0   :  { %v667_v7 = vadd.f32 %v666_v4, %v661_v6  ;;  %v663_v8 = vpop.f32.mrb[7].mxu1  ;;  %v1964_v4 = vld [vmem:[#allocation3 + $0x228] sm:$0xff]  }
 0xdf2   :  { %v668_v1 = vrot.slane %v667_v7, 4 }
 0xdf4   :  { %v669_v9 = vadd.f32 %v668_v1, %v667_v7 }
 0xdf6   :  { %v670_v10 = vrot.slane %v669_v9, 2 }
 0xdf8   :  { %v671_v11 = vadd.f32 %v670_v10, %v669_v9 }
 0xdfa   :  { %v672_v12 = vrot.slane %v671_v11, 1 }
 0xdfc   :  { %v673_v13 = vadd.f32 %v672_v12, %v671_v11  ;;  %v1675_v11 = vld [vmem:[%s2499_s2 + $0x2] ss:$0 sm:$0xff] }
 0xdfe   :  { %674 = vrot.lane.b32.xlu0 %v673_v13, %s2059_s21 }
 0xe70   :  { %v675_v14 = vpop.permute.xlu0 %674 }
 0xe71   :  { %v676_v15 = vadd.f32 %v675_v14, %v673_v13 }
 0xe73   :  { %677 = vrot.lane.b32.xlu1 %v676_v15, %s2060_s22 }
 0xee5   :  { %v678_v16 = vpop.permute.xlu1 %677 }
 0xee6   :  { %v679_v17 = vadd.f32 %v678_v16, %v676_v15  ;;  %v1676_v16 = vld [vmem:[%s2499_s2 + $0x3] ss:$0 sm:$0xff] }
 0xee8   :  { %680 = vrot.lane.b32.xlu0 %v679_v17, %s2061_s23 }
 0xf5a   :  { %v681_v59 = vpop.permute.xlu0 %680 }
 0xf5b   :  { %v682_v18 = vadd.f32 %v681_v59, %v679_v17 }
 0xf5d   :  { %683 = vrot.lane.b32.xlu1 %v682_v18, %s2052_s28 }
 0xfcf   :  { %v684_v60 = vpop.permute.xlu1 %683 }
 0xfd0   :  { %v685_v19 = vadd.f32 %v684_v60, %v682_v18 }
 0xfd2   :  { %v686_v57 = vmul.f32 0.001953125, %v685_v19 }
 0xfd4   :  { %v690_v20 = vrot.slane %v686_v57, %v2227_v52 }
 0xfd6   :  { %v2331_v58 = vsub.f32 %v650_v61, %v690_v20  ;;  %v2333_v21 = vsub.f32 %v653_v62, %v690_v20  ;;  %v2335_v22 = vsub.f32 %v658_v0, %v690_v20  ;;  %v2337_v23 = vsub.f32 %v661_v6, %v690_v20  ;;  %v1958_v61 = vld [vmem:[#allocation3 + $0x218] sm:$0xff]   ;;  %v1959_v62 = vld [vmem:[#allocation3 + $0x1e0] sm:$0xff]   ;;  %v1962_v0 = vld [vmem:[#allocation3 + $0x1e8] sm:$0xff]  }
 0xfd7   :  { %1831 = vmatpush3.bf16.msra.mxu1 %v1958_v61  ;;  %1765 = vmatprep.subr.bf16.mxu0 %v1959_v62  ;;  %v1976_v61 = vld [vmem:[#allocation3 + $0x2c8] sm:$0xff]   ;;  %v1977_v62 = vld [vmem:[#allocation3 + $0x290] sm:$0xff]  }
 0xfd8   :  { %v695_v25 = vmul.f32 %v2331_v58, %v2331_v58  ;;  %v696_v26 = vmul.f32 %v2333_v21, %v2333_v21  ;;  %v697_v27 = vmul.f32 %v2335_v22, %v2335_v22  ;;  %v698_v29 = vmul.f32 %v2337_v23, %v2337_v23  ;;  %1832 = vmatprep.subr.bf16.mxu1 %v2062_v48 }
 0xfd9   :  { %1766 = vmatpush3.bf16.msra.mxu0 %v1960_v49 }
 0xfda   :  { %v699_v28 = vadd.f32 %v696_v26, %v695_v25  ;;  %1767 = vmatprep.subr.bf16.mxu0 %v1962_v0 }
 0xfdb   :  { %1833 = vmatpush3.bf16.msra.mxu1 %v1961_v63 }
 0xfdc   :  { %v700_v30 = vadd.f32 %v699_v28, %v697_v27  ;;  %1834 = vmatprep.subr.bf16.mxu1 %v2062_v48 }
 0xfdd   :  { %1768 = vmatpush3.bf16.msra.mxu0 %v1963_v5 }
 0xfde   :  { %v701_v31 = vadd.f32 %v700_v30, %v698_v29 }
 0xfdf   :  { %1835 = vmatpush3.bf16.msra.mxu1 %v1964_v4 }
 0xfe0   :  { %v702_v32 = vrot.slane %v701_v31, 4  ;;  %1836 = vmatprep.subr.bf16.mxu1 %v2062_v48 }
 0xfe2   :  { %v703_v33 = vadd.f32 %v702_v32, %v701_v31 }
 0xfe4   :  { %v704_v35 = vrot.slane %v703_v33, 2 }
 0xfe6   :  { %v705_v36 = vadd.f32 %v704_v35, %v703_v33  ;;  %v1965_v35 = vld [vmem:[#allocation3 + $0x1f0] sm:$0xff]  }
 0xfe7   :  { %1769 = vmatprep.subr.bf16.mxu0 %v1965_v35 }
 0xfe8   :  { %v706_v37 = vrot.slane %v705_v36, 1 }
 0xfea   :  { %v707_v38 = vadd.f32 %v706_v37, %v705_v36 }
 0xfec   :  { %708 = vrot.lane.b32.xlu0 %v707_v38, %s2059_s21  ;;  %s2067_s21 = smov [#allocation6]  }
0x105e   :  { %v709_v39 = vpop.permute.xlu0 %708 }
0x105f   :  { %v710_v40 = vadd.f32 %v709_v39, %v707_v38 }
0x1061   :  { %711 = vrot.lane.b32.xlu1 %v710_v40, %s2060_s22 }
0x10d3   :  { %v712_v41 = vpop.permute.xlu1 %711 }
0x10d4   :  { %v713_v42 = vadd.f32 %v712_v41, %v710_v40  ;;  %v1966_v40 = vld [vmem:[#allocation3 + $0x1b0] sm:$0xff]  }
0x10d5   :  { %v1967_v41 = vld [vmem:[#allocation3 + $0x230] sm:$0xff]   ;;  %1770 = vmatpush3.bf16.msra.mxu0 %v1966_v40 }
0x10d6   :  { %714 = vrot.lane.b32.xlu0 %v713_v42, %s2061_s23  ;;  %1837 = vmatpush3.bf16.msra.mxu1 %v1967_v41 }
0x10d7   :  { %1838 = vmatprep.subr.bf16.mxu1 %v2062_v48 }
0x1148   :  { %v715_v43 = vpop.permute.xlu0 %714 }
0x1149   :  { %v716_v44 = vadd.f32 %v715_v43, %v713_v42  ;;  %v1968_v42 = vld [vmem:[#allocation3 + $0x1f8] sm:$0xff]  }
0x114a   :  { %v1969_v43 = vld [vmem:[#allocation3 + $0x1b8] sm:$0xff]   ;;  %1771 = vmatprep.subr.bf16.mxu0 %v1968_v42 }
0x114b   :  { %717 = vrot.lane.b32.xlu1 %v716_v44, %s2052_s28  ;;  %1772 = vmatpush3.bf16.msra.mxu0 %v1969_v43 }
0x11bd   :  { %v718_v6 = vpop.permute.xlu1 %717 }
0x11be   :  { %v719_v7 = vadd.f32 %v718_v6, %v716_v44  ;;  %v1970_v44 = vld [vmem:[#allocation3 + $0x238] sm:$0xff]  }
0x11bf   :  { %1839 = vmatpush3.bf16.msra.mxu1 %v1970_v44 }
0x11c0   :  { %v720_v8 = vmul.f32 0.001953125, %v719_v7  ;;  %1844 = vmatprep.subr.bf16.mxu1 %v2062_v48 }
0x11c2   :  { %v723_v1 = vadd.f32 1e-05, %v720_v8 }
0x11c4   :  { %1997 = vrsqrt.f32 %v723_v1 }
0x11ce   :  { %v1998_v9 = vpop.eup %1997 }
0x11cf   :  { %v728_v10 = vrot.slane %v1998_v9, %v2227_v52 }
0x11d1   :  { %v729_v12 = vmul.f32 %v728_v10, %v2331_v58  ;;  %v730_v13 = vmul.f32 %v728_v10, %v2333_v21  ;;  %v731_v14 = vmul.f32 %v728_v10, %v2335_v22  ;;  %v732_v15 = vmul.f32 %v728_v10, %v2337_v23 }
0x11d3   :  { %v737_v17 = vmul.f32 %v1675_v11, %v729_v12  ;;  %v738_v59 = vmul.f32 %v1675_v11, %v730_v13  ;;  %v739_v18 = vmul.f32 %v1675_v11, %v731_v14  ;;  %v740_v60 = vmul.f32 %v1675_v11, %v732_v15 }
0x11d5   :  { %v745_v19 = vadd.f32 %v1676_v16, %v737_v17  ;;  %v746_v57 = vadd.f32 %v1676_v16, %v738_v59  ;;  %v747_v20 = vadd.f32 %v1676_v16, %v739_v18  ;;  %v748_v25 = vadd.f32 %v1676_v16, %v740_v60 }
0x11d7   :  { %v749_v26 = vmax.f32 %v745_v19, 0.0  ;;  %v750_v58 = vmax.f32 %v746_v57, 0.0  ;;  %v751_v27 = vmax.f32 %v747_v20, 0.0  ;;  %v752_v21 = vmax.f32 %v748_v25, 0.0 }
0x11d9   :  { %v753_v28 = vrot.slane %v749_v26, 1  ;;  %v754_v22 = vrot.slane %v750_v58, 1  ;;  %v755_v29 = vrot.slane %v751_v27, 1  ;;  %v756_v23 = vrot.slane %v752_v21, 1 }
0x11db   :  { %v757_v30 = vsel %vm118_vm0, %v755_v29, %v756_v23  ;;  %v758_v31 = vsel %vm118_vm0, %v754_v22, %v755_v29  ;;  %v759_v32 = vsel %vm118_vm0, %v753_v28, %v754_v22  ;;  %v760_v33 = vsel %vm118_vm0, %v756_v23, %v753_v28 }
0x11dc   :  { %v761_v36 = vmax.f32 %v749_v26, %v759_v32  ;;  %v762_v37 = vmax.f32 %v750_v58, %v758_v31  ;;  %v763_v38 = vmax.f32 %v751_v27, %v757_v30  ;;  %v764_v39 = vmax.f32 %v752_v21, %v760_v33 }
0x11de   :  { %765 = vst [vmem:[#allocation2] sm:$0xff] %v761_v36  ;;  %766 = vst [vmem:[#allocation2 + $0x8] sm:$0xff] %v762_v37 }
0x11df   :  { %767 = vst [vmem:[#allocation2 + $0x10] sm:$0xff] %v763_v38  ;;  %768 = vst [vmem:[#allocation2 + $0x18] sm:$0xff] %v764_v39 }
0x11e5   :  { %v769_v45 = vld [vmem:[#allocation2] ss:$2 sm:$0xff] }
0x11e6   :  { %v771_v46 = vld [vmem:[#allocation2 + $0x10] ss:$2 sm:$0xff] }
0x11e7   :  { %v1918_v47 = vpack.i.bf16 %v771_v46, %v769_v45 }
0x11e9   :  { %1919 = vrot.lane.b32.xlu0 %v1918_v47, %s2064_s29 }
0x125b   :  { %v1920_v34 = vpop.permute.xlu0 %1919 }
0x125c   :  { %v1922_v51 = vunpack.i.h.bf16 %v1920_v34  ;;  %v1921_v53 = vunpack.i.l.bf16 %v1920_v34 }
0x125e   :  { %v777_v54 = vmax.f32 %v771_v46, %v1922_v51  ;;  %v776_v56 = vmax.f32 %v769_v45, %v1921_v53  ;;  %v1971_v51 = vld [vmem:[#allocation3 + $0x280] sm:$0xff]  }
0x125f   :  { %v1972_v53 = vld [vmem:[#allocation3 + $0x240] sm:$0xff]   ;;  %1788 = vmatprep.subr.bf16.mxu0 %v1971_v51 }
0x1260   :  { %v805_v63 = vrot.slane %v777_v54, 7  ;;  %v813_v49 = vrot.slane %v777_v54, 1  ;;  %v804_v0 = vrot.slane %v776_v56, 7  ;;  %v812_v4 = vrot.slane %v776_v56, 1 }
0x1261   :  { %v868_v5 = vpack.c.bf16 %v777_v54, %v776_v56  ;;  %v1973_v54 = vld [vmem:[#allocation3 + $0x2c0] sm:$0xff]   ;;  %v1974_v56 = vld [vmem:[#allocation3 + $0x288] sm:$0xff]  }
0x1262   :  { %v806_v6 = vsel %vm101_vm1, %v804_v0, %v805_v63  ;;  %v807_v7 = vsel %vm101_vm1, %v805_v63, %v804_v0  ;;  %v814_v8 = vsel %vm118_vm0, %v812_v4, %v813_v49  ;;  %v815_v1 = vsel %vm118_vm0, %v813_v49, %v812_v4  ;;  %v1978_v63 = vld [vmem:[#allocation3 + $0x250] sm:$0xff]   ;;  %v1980_v49 = vld [vmem:[#allocation3 + $0x298] sm:$0xff]  }
0x1263   :  { %v1704_v9 = vpack.c.bf16 %v806_v6, %v807_v7  ;;  %v1709_v10 = vpack.c.bf16 %v815_v1, %v814_v8  ;;  %1046 = vmatprep.mubr.bf16.mxu0 %v868_v5  ;;  %v1982_v0 = vld [vmem:[#allocation3 + $0x2d8] sm:$0xff]   ;;  %v1983_v5 = vld [vmem:[#allocation3 + $0x2a0] sm:$0xff]   ;;  %v1986_v8 = vld [vmem:[#allocation3 + $0x2a8] sm:$0xff]  }
0x1264   :  { %v1981_v4 = vld [vmem:[#allocation3 + $0x258] sm:$0xff]   ;;  %v1985_v6 = vld [vmem:[#allocation3 + $0x2e0] sm:$0xff]   ;;  %v1988_v1 = vld [vmem:[#allocation3 + $0x2e8] sm:$0xff]  }
0x1265   :  { %1705 = vmatmul.mubr.msk.bf16.vlgmr.msra.gmra.mrb[8].mxu0 %vm1703_vm13, %v1704_v9  ;;  %1841 = vmatmul.mubr.msk.bf16.vlgmr.msra.gmra.mrb[8].mxu1 %vm1708_vm14, %v1709_v10  ;;  %v1984_v7 = vld [vmem:[#allocation3 + $0x260] sm:$0xff]   ;;  %v1987_v9 = vld [vmem:[#allocation3 + $0x268] sm:$0xff]   ;;  %v1989_v10 = vld [vmem:[#allocation3 + $0x2b0] sm:$0xff]  }
0x1266   :  { %1860 = vmatprep.mubr.msk.bf16.mxu1 %vm2063_vm8, %v2062_v48  ;;  %1845 = vmatpush3.bf16.msra.mxu1 %v1973_v54 }
0x1267   :  { %1789 = vmatpush3.bf16.msra.mxu0 %v1972_v53  ;;  %1846 = vmatprep.subr.bf16.mxu1 %v2062_v48 }
0x1268   :  { %1790 = vmatprep.subr.bf16.mxu0 %v1974_v56 }
0x126a   :  { %1847 = vmatpush3.bf16.msra.mxu1 %v1976_v61 }
0x126b   :  { %1791 = vmatpush3.bf16.msra.mxu0 %v1975_v55  ;;  %1848 = vmatprep.subr.bf16.mxu1 %v2062_v48 }
0x126c   :  { %1792 = vmatprep.subr.bf16.mxu0 %v1977_v62 }
0x126e   :  { %1849 = vmatpush3.bf16.msra.mxu1 %v1979_v3 }
0x126f   :  { %1793 = vmatpush3.bf16.msra.mxu0 %v1978_v63  ;;  %1850 = vmatprep.subr.bf16.mxu1 %v2062_v48 }
0x1270   :  { %1794 = vmatprep.subr.bf16.mxu0 %v1980_v49 }
0x1272   :  { %1851 = vmatpush3.bf16.msra.mxu1 %v1982_v0 }
0x1273   :  { %1795 = vmatpush3.bf16.msra.mxu0 %v1981_v4  ;;  %1852 = vmatprep.subr.bf16.mxu1 %v2062_v48 }
0x1274   :  { %1796 = vmatprep.subr.bf16.mxu0 %v1983_v5 }
0x1276   :  { %1853 = vmatpush3.bf16.msra.mxu1 %v1985_v6 }
0x1277   :  { %1797 = vmatpush3.bf16.msra.mxu0 %v1984_v7  ;;  %1854 = vmatprep.subr.bf16.mxu1 %v2062_v48 }
0x1278   :  { %1798 = vmatprep.subr.bf16.mxu0 %v1986_v8 }
0x127a   :  { %1855 = vmatpush3.bf16.msra.mxu1 %v1988_v1 }
0x127b   :  { %1799 = vmatpush3.bf16.msra.mxu0 %v1987_v9  ;;  %1856 = vmatprep.subr.bf16.mxu1 %v2062_v48 }
0x127c   :  { %1800 = vmatprep.subr.bf16.mxu0 %v1989_v10 }
0x1338   :  { %v1773_v11 = vpop.f32.mrb[8].mxu0  ;;  %v1089_v12 = vpop.f32.mrb[8].mxu1 }
0x1339   :  { %v1774_v13 = vpop.f32.mrb[9].mxu0  ;;  %v1842_v14 = vpop.f32.mrb[9].mxu1 }
0x133a   :  { %v1775_v15 = vadd.f32 %v1774_v13, %v1773_v11  ;;  %v1776_v16 = vpop.f32.mrb[10].mxu0  ;;  %v1092_v17 = vpop.f32.mrb[10].mxu1  ;;  %v1991_v11 = vld [vmem:[#allocation3 + $0x2f0] sm:$0xff]  }
0x133b   :  { %v1777_v59 = vpop.f32.mrb[11].mxu0  ;;  %v1843_v18 = vpop.f32.mrb[11].mxu1  ;;  %1857 = vmatpush3.bf16.msra.mxu1 %v1991_v11 }
0x133c   :  { %v1090_v60 = vadd.f32 %v1775_v15, %v1089_v12  ;;  %v1778_v19 = vadd.f32 %v1777_v59, %v1776_v16  ;;  %v1990_v12 = vld [vmem:[#allocation3 + $0x270] sm:$0xff]   ;;  %1858 = vmatprep.subr.bf16.mxu1 %v2062_v48  ;;  %v1711_v18 = vld [vmem:[%s2499_s2 + $0x4] ss:$0 sm:$0xff] }
0x133d   :  { %1801 = vmatpush3.bf16.msra.mxu0 %v1990_v12 }
0x133e   :  { %v1093_v57 = vadd.f32 %v1778_v19, %v1092_v17 }
0x1340   :  { %v1096_v20 = vadd.f32 %v1093_v57, %v1090_v60 }
0x1342   :  { %v1097_v25 = vrot.slane %v1096_v20, 4 }
0x1344   :  { %v1098_v26 = vadd.f32 %v1097_v25, %v1096_v20 }
0x1346   :  { %v1099_v58 = vrot.slane %v1098_v26, 2 }
0x1348   :  { %v1100_v27 = vadd.f32 %v1099_v58, %v1098_v26 }
0x134a   :  { %v1101_v21 = vrot.slane %v1100_v27, 1 }
0x134c   :  { %v1102_v28 = vadd.f32 %v1101_v21, %v1100_v27 }
0x134e   :  { %1103 = vrot.lane.b32.xlu1 %v1102_v28, %s2060_s22 }
0x13c0   :  { %v1104_v22 = vpop.permute.xlu1 %1103 }
0x13c1   :  { %v1105_v29 = vadd.f32 %v1104_v22, %v1102_v28 }
0x13c3   :  { %1106 = vrot.lane.b32.xlu0 %v1105_v29, %s2061_s23 }
0x1435   :  { %v1107_v23 = vpop.permute.xlu0 %1106 }
0x1436   :  { %v1108_v30 = vadd.f32 %v1107_v23, %v1105_v29  ;;  %v1992_v29 = vld [vmem:[#allocation3 + $0x2b8] sm:$0xff]  }
0x1437   :  { %1802 = vmatprep.subr.bf16.mxu0 %v1992_v29 }
0x1438   :  { %1109 = vrot.lane.b32.xlu1 %v1108_v30, %s2052_s28 }
0x14aa   :  { %v1110_v31 = vpop.permute.xlu1 %1109 }
0x14ab   :  { %v1111_v32 = vadd.f32 %v1110_v31, %v1108_v30  ;;  %v1993_v31 = vld [vmem:[#allocation3 + $0x278] sm:$0xff]  }
0x14ac   :  { %1803 = vmatpush3.bf16.msra.mxu0 %v1993_v31 }
0x14ad   :  { %v1113_v33 = vmul.f32 0.0078125, %v1111_v32  ;;  %v1994_v32 = vld [vmem:[#allocation3 + $0x2f8] sm:$0xff]  }
0x14ae   :  { %1859 = vmatpush3.bf16.msra.mxu1 %v1994_v32  ;;  %v1545_v32 = vld [vmem:[%s2500_s3 + $0x10] sm:$0xff] }
0x14af   :  { %v1117_v35 = vrot.slane %v1113_v33, %v2227_v52 }
0x14b1   :  { %v2421_v36 = vsub.f32 %v1090_v60, %v1117_v35  ;;  %v2423_v37 = vsub.f32 %v1093_v57, %v1117_v35  ;;  %v1712_v57 = vld [vmem:[%s2499_s2 + $0x5] ss:$0 sm:$0xff] }
0x14b3   :  { %v1120_v38 = vmul.f32 %v2421_v36, %v2421_v36  ;;  %v1121_v39 = vmul.f32 %v2423_v37, %v2423_v37 }
0x14b5   :  { %v1122_v40 = vadd.f32 %v1121_v39, %v1120_v38 }
0x14b7   :  { %v1123_v41 = vrot.slane %v1122_v40, 4 }
0x14b9   :  { %v1124_v42 = vadd.f32 %v1123_v41, %v1122_v40 }
0x14bb   :  { %v1125_v43 = vrot.slane %v1124_v42, 2 }
0x14bd   :  { %v1126_v44 = vadd.f32 %v1125_v43, %v1124_v42 }
0x14bf   :  { %v1127_v45 = vrot.slane %v1126_v44, 1 }
0x14c1   :  { %v1128_v46 = vadd.f32 %v1127_v45, %v1126_v44 }
0x14c3   :  { %1129 = vrot.lane.b32.xlu0 %v1128_v46, %s2060_s22  ;;  %s1636_s22 = sshll.u32 %s2067_s21, 4  ;;  %s1637_s22 = int_to_ptr.vmem [resolvable:$true] %s1636_s22 }
0x14c4   :  { %p2030_p9 = scmp.lt.s32.totalorder %s1637_s22, %s1637_s22 }
0x1535   :  { %v1130_v47 = vpop.permute.xlu0 %1129 }
0x1536   :  { %v1131_v24 = vadd.f32 %v1130_v47, %v1128_v46 }
0x1538   :  { %1132 = vrot.lane.b32.xlu1 %v1131_v24, %s2061_s23 }
0x15aa   :  { %v1133_v50 = vpop.permute.xlu1 %1132 }
0x15ab   :  { %v1134_v34 = vadd.f32 %v1133_v50, %v1131_v24 }
0x15ad   :  { %1135 = vrot.lane.b32.xlu0 %v1134_v34, %s2052_s28 }
0x161f   :  { %v1136_v13 = vpop.permute.xlu0 %1135 }
0x1620   :  { %v1137_v14 = vadd.f32 %v1136_v13, %v1134_v34 }
0x1622   :  { %v1138_v15 = vmul.f32 0.0078125, %v1137_v14 }
0x1624   :  { %v1141_v16 = vadd.f32 1e-05, %v1138_v15 }
0x1626   :  { %1999 = vrsqrt.f32 %v1141_v16  ;;  %v1543_v16 = vld [vmem:[%s2500_s3] sm:$0xff] }
0x1630   :  { %v2000_v17 = vpop.eup %1999 }
0x1631   :  { %v1146_v59 = vrot.slane %v2000_v17, %v2227_v52  ;;  %v1544_v17 = vld [vmem:[%s2500_s3 + $0x8] sm:$0xff] }
0x1633   :  { %v1147_v60 = vmul.f32 %v1146_v59, %v2421_v36  ;;  %v1148_v19 = vmul.f32 %v1146_v59, %v2423_v37  ;;  %v1179_v37 = vand.u32 3, %v2114_v2  ;;  %v2066_v59 = vmov 0.0|0.0  }
0x1634   :  { %1875 = vmatprep.subr.bf16.mxu0 %v2066_v59 }
0x1635   :  { %v1153_v20 = vmul.f32 %v1711_v18, %v1147_v60  ;;  %v1154_v25 = vmul.f32 %v1711_v18, %v1148_v19  ;;  %vm1755_vm15 = vcmp.ne.s32.totalorder %v1179_v37, 0  ;;  %vm1756_vm1 = vcmp.ne.s32.totalorder %v1179_v37, 3 }
0x1636   :  { %vm1744_vm2 = vmpackc.low %vm1756_vm1, %vm1756_vm1  ;;  %v1876_v18 = vpack.c.bf16 %v1544_v17, %v1543_v16 }
0x1637   :  { %v1159_v26 = vadd.f32 %v1712_v57, %v1153_v20  ;;  %v1160_v58 = vadd.f32 %v1712_v57, %v1154_v25 }
0x1639   :  { %v1161_v27 = vmax.f32 %v1159_v26, 0.0  ;;  %v1162_v21 = vmax.f32 %v1160_v58, 0.0  ;;  %v1747_v58 = vld [vmem:[%s2499_s2 + $0x6] ss:$0 sm:$0xff] }
0x163b   :  { %v1163_v28 = vrot.slane %v1161_v27, 1  ;;  %v1164_v22 = vrot.slane %v1162_v21, 1 }
0x163d   :  { %v1165_v23 = vsel %vm118_vm0, %v1163_v28, %v1164_v22  ;;  %v1166_v30 = vsel %vm118_vm0, %v1164_v22, %v1163_v28  ;;  %vm1739_vm0 = vmpackc.low %vm1755_vm15, %vm1755_vm15 }
0x163e   :  { %v1167_v33 = vmax.f32 %v1161_v27, %v1165_v23  ;;  %v1168_v35 = vmax.f32 %v1162_v21, %v1166_v30  ;;  %v1748_v21 = vld [vmem:[%s2499_s2 + $0x7] ss:$0 sm:$0xff] }
0x1640   :  { %1169 = vst [vmem:[#allocation2] sm:$0xff] %v1167_v33  ;;  %1170 = vst [vmem:[#allocation2 + $0x8] sm:$0xff] %v1168_v35 }
0x1647   :  { %v1171_v36 = vld [vmem:[#allocation2] ss:$2 sm:$0xff] }
0x1648   :  { %1172 = vrot.lane.b32.xlu1 %v1171_v36, %s2065_s1 }
0x16ba   :  { %v1173_v38 = vpop.permute.xlu1 %1172 }
0x16bb   :  { %v1174_v39 = vmax.f32 %v1171_v36, %v1173_v38 }
0x16bd   :  { %v1188_v40 = vrot.slane %v1174_v39, 7  ;;  %v1191_v41 = vrot.slane %v1174_v39, 1  ;;  %v1243_v42 = vpack.c.bf16 %v1174_v39, %v1174_v39 }
0x16bf   :  { %v1740_v43 = vpack.c.bf16 %v1188_v40, %v1188_v40  ;;  %v1745_v44 = vpack.c.bf16 %v1191_v41, %v1191_v41  ;;  %1421 = vmatprep.mubr.bf16.mxu0 %v1243_v42 }
0x16c1   :  { %1741 = vmatmul.mubr.msk.bf16.vlgmr.msra.gmra.mrb[12].mxu0 %vm1739_vm0, %v1740_v43  ;;  %1861 = vmatmul.mubr.msk.bf16.vlgmr.msra.gmra.mrb[12].mxu1 %vm1744_vm2, %v1745_v44 }
0x16c2   :  { %1872 = vmatprep.mubr.msk.f32.mxu0 %vm2063_vm8, %v2062_v48  ;;  %1877 = vmatpush3.bf16.msra.mxu0 %v1876_v18 }
0x16c3   :  { %1878 = vmatprep.subr.bf16.mxu0 %v2066_v59 }
0x1794   :  { %v1804_v45 = vpop.f32.mrb[12].mxu0  ;;  %v1463_v46 = vpop.f32.mrb[12].mxu1 }
0x1795   :  { %v1805_v2 = vpop.f32.mrb[13].mxu0  ;;  %v1862_v47 = vpop.f32.mrb[13].mxu1 }
0x1796   :  { %v1806_v24 = vadd.f32 %v1805_v2, %v1804_v45  ;;  %v1807_v50 = vpop.f32.mrb[14].mxu0  ;;  %v1466_v34 = vpop.f32.mrb[14].mxu1  ;;  %v1749_v45 = vld [vmem:[%s2501_s4] ss:$0 sm:$0xff] }
0x1797   :  { %v1808_v51 = vpop.f32.mrb[15].mxu0  ;;  %v1863_v53 = vpop.f32.mrb[15].mxu1 }
0x1798   :  { %v1464_v54 = vadd.f32 %v1806_v24, %v1463_v46 }
0x179a   :  { %v1469_v56 = vrot.slane %v1464_v54, 4 }
0x179c   :  { %v1470_v61 = vadd.f32 %v1469_v56, %v1464_v54 }
0x179e   :  { %v1471_v55 = vrot.slane %v1470_v61, 2 }
0x17a0   :  { %v1472_v62 = vadd.f32 %v1471_v55, %v1470_v61 }
0x17a2   :  { %v1473_v3 = vrot.slane %v1472_v62, 1 }
0x17a4   :  { %v1474_v63 = vadd.f32 %v1473_v3, %v1472_v62 }
0x17a6   :  { %1475 = vrot.lane.b32.xlu0 %v1474_v63, %s2061_s23 }
0x1818   :  { %v1476_v49 = vpop.permute.xlu0 %1475 }
0x1819   :  { %v1477_v48 = vadd.f32 %v1476_v49, %v1474_v63 }
0x181b   :  { %1478 = vrot.lane.b32.xlu1 %v1477_v48, %s2052_s28 }
0x188d   :  { %v1479_v0 = vpop.permute.xlu1 %1478 }
0x188e   :  { %v1480_v4 = vadd.f32 %v1479_v0, %v1477_v48 }
0x1890   :  { %v1482_v5 = vmul.f32 0.03125, %v1480_v4 }
0x1892   :  { %v1486_v6 = vrot.slane %v1482_v5, %v2227_v52 }
0x1894   :  { %v1487_v7 = vsub.f32 %v1464_v54, %v1486_v6 }
0x1896   :  { %v1488_v8 = vmul.f32 %v1487_v7, %v1487_v7 }
0x1898   :  { %v1489_v1 = vrot.slane %v1488_v8, 4 }
0x189a   :  { %v1490_v9 = vadd.f32 %v1489_v1, %v1488_v8 }
0x189c   :  { %v1491_v10 = vrot.slane %v1490_v9, 2 }
0x189e   :  { %v1492_v11 = vadd.f32 %v1491_v10, %v1490_v9 }
0x18a0   :  { %v1493_v12 = vrot.slane %v1492_v11, 1 }
0x18a2   :  { %v1494_v13 = vadd.f32 %v1493_v12, %v1492_v11 }
0x18a4   :  { %1495 = vrot.lane.b32.xlu0 %v1494_v13, %s2061_s23 }
0x1916   :  { %v1496_v14 = vpop.permute.xlu0 %1495 }
0x1917   :  { %v1497_v15 = vadd.f32 %v1496_v14, %v1494_v13 }
0x1919   :  { %1498 = vrot.lane.b32.xlu1 %v1497_v15, %s2052_s28 }
0x198b   :  { %v1499_v60 = vpop.permute.xlu1 %1498 }
0x198c   :  { %v1500_v19 = vadd.f32 %v1499_v60, %v1497_v15 }
0x198e   :  { %v1501_v57 = vmul.f32 0.03125, %v1500_v19 }
0x1990   :  { %v1504_v20 = vadd.f32 1e-05, %v1501_v57 }
0x1992   :  { %2001 = vrsqrt.f32 %v1504_v20 }
0x199c   :  { %v2002_v25 = vpop.eup %2001 }
0x199d   :  { %v1509_v26 = vrot.slane %v2002_v25, %v2227_v52  ;;  %v1546_v52 = vld [vmem:[%s2500_s3 + $0x18] sm:$0xff] }
0x199e   :  { %v1879_v36 = vpack.c.bf16 %v1546_v52, %v1545_v32 }
0x199f   :  { %v1510_v27 = vmul.f32 %v1509_v26, %v1487_v7 }
0x19a0   :  { %1880 = vmatpush3.bf16.msra.mxu0 %v1879_v36 }
0x19a1   :  { %v1515_v28 = vmul.f32 %v1747_v58, %v1510_v27 }
0x19a3   :  { %v1520_v22 = vadd.f32 %v1748_v21, %v1515_v28 }
0x19a5   :  { %v1521_v29 = vmax.f32 %v1520_v22, 0.0 }
0x19a7   :  { %v1522_v23 = vrot.slane %v1521_v29, 1  ;;  %v1524_v31 = vrot.slane %v1521_v29, 2  ;;  %v1526_v35 = vrot.slane %v1521_v29, 3 }
0x19a9   :  { %v1523_v30 = vmax.f32 %v1521_v29, %v1522_v23 }
0x19ab   :  { %v1525_v33 = vmax.f32 %v1523_v30, %v1524_v31 }
0x19ad   :  { %v1527_v37 = vmax.f32 %v1525_v33, %v1526_v35 }
0x19af   :  { %1528 = vst [vmem:[#allocation2] sm:$0xff] %v1527_v37 }
0x19b6   :  { %v1529_v38 = vld [vmem:[#allocation2] ss:$4 sm:$0x3] }
0x19b7   :  { %1535 = vrot.lane.b32.xlu1 %v1529_v38, %s2052_s28  ;;  %1531 = vrot.lane.b32.xlu0 %v1529_v38, %s2058_s16  ;;  %s2025_s28 = scalar_lea.vmem %s1637_s22, 32 }
0x19b8   :  { %p2026_p8 = scmp.ne.s32.totalorder %s1637_s22, %s2025_s28  ;;  %p2031_p10 = scmp.lt.s32.totalorder %s2025_s28, %s2025_s28 }
0x19ba   :  { %p2032_p11 = por %p2031_p10, %p2030_p9 }
0x19bb   :  { %1539 = vrot.lane.b32.xlu0 %v1529_v38, %s2061_s23 }
0x19bc   :  { %p2033_p12 = pnand %p2032_p11, %p2026_p8 }
0x1a29   :  { %v1532_v39 = vpop.permute.xlu0 %1531  ;;  %v1536_v41 = vpop.permute.xlu1 %1535 }
0x1a2a   :  { %v1534_v40 = vmax.f32 %v1529_v38, %v1532_v39 }
0x1a2c   :  { %v1538_v42 = vmax.f32 %v1534_v40, %v1536_v41 }
0x1a2d   :  { %v1540_v43 = vpop.permute.xlu0 %1539 }
0x1a2e   :  { %v1542_v44 = vmax.f32 %v1538_v42, %v1540_v43 }
0x1a30   :  { %1873 = vmatmul.mubr.msk.f32.vlgmr.msra.gmra.mrb[16].mxu0 %vm1554_vm3, %v1542_v44 }
0x1b03   :  { %v1624_v46 = vpop.f32.mrb[16].mxu0 }
0x1b04   :  { %v1625_v2 = vadd.f32 %v1749_v45, %v1624_v46  ;;  %v1874_v47 = vpop.f32.mrb[17].mxu0 }
0x1b06   :  { %1629 = vst.msk [vmem:[#allocation6] sm:$0x3] %vm1628_vm4, %v1625_v2 }
0x1b07   :  { %2036 = shalt.err (!%p2033_p12)
}
0x1b08   :  { %s2037_s24 = scalar_lea.hbm %s2502_s5, 32 }
0x1b09   :  { %p2038_p13 = scmp.ne.s32.totalorder %s2502_s5, %s2037_s24  ;;  %p2041_p0 = scmp.lt.u32.totalorder %s2037_s24, %s2502_s5 }
0x1b0b   :  { %p2043_p1 = pnand %p2041_p0, %p2038_p13 }
0x1b0d   :  { %2046 = shalt.err (!%p2043_p1)
}
0x1b0e   :  { %1639 = dma.vmem_to_hbm [thread:$0]  %s1637_s22, 32, %s2502_s5, [#allocation5]  }
0x1b0f   :  { %2049 = dma.done.wait [#allocation5], 32  }
0x1b10   :  { %2050 = vsyncadd [#allocation5], 4294967264 }
0x1b11   :  { %1643 = vsyncpa [#allocation4], 1 }
0x1b12   :  { %1644 = vsyncpa [#allocation5], 1 }

</bundles_post_ra>
